<compile_context>
chip_gen: v5e
topology: v5e:2x2
jax: 0.10.0
libtpu: 0.0.40
codegen_flags: <defaults>
</compile_context>

<pallas_src>
import functools
import math

import jax
import jax.numpy as jnp
from jax.experimental import pallas as pl
from jax.experimental.pallas import tpu as pltpu

# ----------------------- small synthetic Llama config -----------------------
VOCAB = 256
HIDDEN = 64
N_LAYERS = 2
N_HEADS = 4
HEAD_DIM = HIDDEN // N_HEADS        # 16
INTERMEDIATE = 128
RMS_EPS = 1e-6
ROPE_THETA = 10000.0


# ------------------------------- Pallas kernel ------------------------------
def _llama_kernel(tok_ref, embed_ref, attn_norm_ref, mlp_norm_ref,
                  wqkv_ref, wo_ref, wgu_ref, wd_ref,
                  cos_ref, sin_ref, rot_ref, mask_ref,
                  final_norm_ref, lm_head_ref,
                  logits_ref,            # output (written at the last layer)
                  x_ref,                 # VMEM scratch: resident residual
                  *, eps, scale):
    """One grid step = one transformer layer over all B*S rows.

    The residual stream lives in x_ref (VMEM scratch, persistent across grid
    steps).  Layer 0 additionally materializes the embeddings (one-hot matmul);
    the last layer additionally runs the final RMSNorm + lm_head and writes the
    lane-dense logits output.
    """
    layer = pl.program_id(0)
    n_layers = pl.num_programs(0)

    # ---------------- layer 0: embedding lookup (one-hot @ table) ----------------
    @pl.when(layer == 0)
    def _():
        tok = tok_ref[...]                                        # (R, 1) int32
        rows = tok.shape[0]
        vocab_iota = jax.lax.broadcasted_iota(jnp.int32, (rows, VOCAB), 1)
        onehot = jnp.where(vocab_iota == tok, 1.0, 0.0)           # (R, VOCAB)
        x_ref[...] = jnp.dot(onehot, embed_ref[...],
                             preferred_element_type=jnp.float32)  # (R, H)

    x = x_ref[...]                                                # (R, H) residual

    def rmsnorm(v, w):                                            # HF LlamaRMSNorm
        var = jnp.sum(v * v, axis=-1, keepdims=True) * (1.0 / HIDDEN)
        return v * jax.lax.rsqrt(var + eps) * w

    cos = cos_ref[...]                                            # (R, H) per-head-tiled
    sin = sin_ref[...]                                            # (R, H)
    rot = rot_ref[...]                                            # (H, H) signed rotate_half perm
    mask = mask_ref[...]                                          # (R, R) block-diag causal
    wo = wo_ref[...]                                              # (H, H)

    # ---------------- self-attention block ----------------
    h = rmsnorm(x, attn_norm_ref[...])
    qkv = jnp.dot(h, wqkv_ref[...], preferred_element_type=jnp.float32)  # (R, 3H)
    q = qkv[:, :HIDDEN]
    k = qkv[:, HIDDEN:2 * HIDDEN]
    v = qkv[:, 2 * HIDDEN:]

    # Full-width RoPE via the idle MXU: rope(t) = t*cos + (t @ P)*sin
    q = q * cos + jnp.dot(q, rot, preferred_element_type=jnp.float32) * sin
    k = k * cos + jnp.dot(k, rot, preferred_element_type=jnp.float32) * sin

    attn_out = jnp.zeros_like(x)                                  # (R, H)
    for hd in range(N_HEADS):
        sl = slice(hd * HEAD_DIM, (hd + 1) * HEAD_DIM)
        qh = q[:, sl]
        kh = k[:, sl]
        vh = v[:, sl]
        s = jnp.dot(qh, kh.T, preferred_element_type=jnp.float32) * scale + mask
        m = jnp.max(s, axis=-1, keepdims=True)
        p = jnp.exp(s - m)
        p = p / jnp.sum(p, axis=-1, keepdims=True)                # exact softmax
        ho = jnp.dot(p, vh, preferred_element_type=jnp.float32)   # (R, D)
        # Accumulate each head directly through its Wo row-slice (no concat).
        attn_out = attn_out + jnp.dot(ho, wo[sl, :],
                                      preferred_element_type=jnp.float32)

    x = x + attn_out

    # ---------------- SwiGLU MLP block ----------------
    h = rmsnorm(x, mlp_norm_ref[...])
    gu = jnp.dot(h, wgu_ref[...], preferred_element_type=jnp.float32)    # (R, 2I)
    g = gu[:, :INTERMEDIATE]
    u = gu[:, INTERMEDIATE:]
    act = g * jax.lax.logistic(g) * u
    x = x + jnp.dot(act, wd_ref[...], preferred_element_type=jnp.float32)

    x_ref[...] = x

    # ---------------- last layer: final RMSNorm + lm_head ----------------
    @pl.when(layer == n_layers - 1)
    def _():
        hf = rmsnorm(x, final_norm_ref[...])
        logits_ref[...] = jnp.dot(hf, lm_head_ref[...],
                                  preferred_element_type=jnp.float32)    # (R, VOCAB)


# --------------------------------- model glue ---------------------------------
def rope_tables(seq_len, dim, theta):
    """HF-style cos/sin tables of shape (S, head_dim)."""
    inv_freq = 1.0 / (theta ** (jnp.arange(0, dim, 2, dtype=jnp.float32) / dim))
    t = jnp.arange(seq_len, dtype=jnp.float32)
    freqs = jnp.outer(t, inv_freq)                       # (S, D/2)
    emb = jnp.concatenate([freqs, freqs], axis=-1)       # (S, D)
    return jnp.cos(emb), jnp.sin(emb)


def rotate_half_matrix():
    """Block-diagonal signed permutation P with t @ P == rotate_half(t) per head."""
    half = HEAD_DIM // 2
    idx = jnp.arange(half)
    blk = jnp.zeros((HEAD_DIM, HEAD_DIM), jnp.float32)
    blk = blk.at[idx + half, idx].set(-1.0)              # -t[D/2:] -> first half
    blk = blk.at[idx, idx + half].set(1.0)               #  t[:D/2] -> second half
    return jnp.kron(jnp.eye(N_HEADS, dtype=jnp.float32), blk)   # (HIDDEN, HIDDEN)


def init_params(key):
    scale = 0.02

    def dense(k, shape):
        return scale * jax.random.normal(k, shape, dtype=jnp.float32)

    keys = jax.random.split(key, 2 + N_LAYERS)
    wqkv, wo, wgu, wd = [], [], [], []
    for l in range(N_LAYERS):
        lk = jax.random.split(keys[2 + l], 7)
        # Concatenated Wq|Wk|Wv (H, 3H) and Wg|Wu (H, 2I) -> single wide matmuls.
        wqkv.append(jnp.concatenate(
            [dense(lk[0], (HIDDEN, HIDDEN)),
             dense(lk[1], (HIDDEN, HIDDEN)),
             dense(lk[2], (HIDDEN, HIDDEN))], axis=-1))
        wo.append(dense(lk[3], (HIDDEN, HIDDEN)))
        wgu.append(jnp.concatenate(
            [dense(lk[4], (HIDDEN, INTERMEDIATE)),
             dense(lk[5], (HIDDEN, INTERMEDIATE))], axis=-1))
        wd.append(dense(lk[6], (INTERMEDIATE, HIDDEN)))

    return {
        "embed": dense(keys[0], (VOCAB, HIDDEN)),
        "lm_head": dense(keys[1], (HIDDEN, VOCAB)),
        "final_norm": jnp.ones((1, HIDDEN), jnp.float32),
        "attn_norm": jnp.ones((N_LAYERS, 1, HIDDEN), jnp.float32),
        "mlp_norm": jnp.ones((N_LAYERS, 1, HIDDEN), jnp.float32),
        "wqkv": jnp.stack(wqkv),    # (L, H, 3H)
        "wo": jnp.stack(wo),        # (L, H, H)
        "wgu": jnp.stack(wgu),      # (L, H, 2I)
        "wd": jnp.stack(wd),        # (L, I, H)
    }


def llama_forward(tokens, params):
    """Returns logits (B, S, VOCAB); HF returns CausalLMOutputWithPast whose
    .logits is exactly this tensor."""
    B, S = tokens.shape
    R = B * S
    tok_col = tokens.reshape(R, 1).astype(jnp.int32)

    # RoPE tables tiled over batch (rows) and heads (lanes): (R, HIDDEN).
    cos, sin = rope_tables(S, HEAD_DIM, ROPE_THETA)
    cos_full = jnp.tile(cos, (B, N_HEADS))
    sin_full = jnp.tile(sin, (B, N_HEADS))
    rot = rotate_half_matrix()                                    # (H, H)

    # attention_mask == ones => only causal masking applies.  Batch collapsed
    # into rows => BLOCK-DIAGONAL causal mask (no cross-sequence attention).
    r = jnp.arange(R)
    same_seq = (r[:, None] // S) == (r[None, :] // S)
    causal = r[None, :] <= r[:, None]
    mask = jnp.where(same_seq & causal, 0.0, -1e30).astype(jnp.float32)   # (R, R)

    scale = 1.0 / math.sqrt(HEAD_DIM)

    layer_spec = lambda l: (l, 0, 0)        # per-layer weight slice (DMA'd once, prefetched)
    const_spec = lambda l: (0, 0)           # shared tables / head weights (DMA'd once)

    logits = pl.pallas_call(
        functools.partial(_llama_kernel, eps=RMS_EPS, scale=scale),
        out_shape=jax.ShapeDtypeStruct((R, VOCAB), jnp.float32),
        grid=(N_LAYERS,),
        in_specs=[
            pl.BlockSpec((R, 1), const_spec),                              # tokens
            pl.BlockSpec((VOCAB, HIDDEN), const_spec),                     # embed table
            pl.BlockSpec((None, 1, HIDDEN), layer_spec),                   # attn_norm
            pl.BlockSpec((None, 1, HIDDEN), layer_spec),                   # mlp_norm
            pl.BlockSpec((None, HIDDEN, 3 * HIDDEN), layer_spec),          # Wq|Wk|Wv
            pl.BlockSpec((None, HIDDEN, HIDDEN), layer_spec),              # Wo
            pl.BlockSpec((None, HIDDEN, 2 * INTERMEDIATE), layer_spec),    # Wg|Wu
            pl.BlockSpec((None, INTERMEDIATE, HIDDEN), layer_spec),        # Wd
            pl.BlockSpec((R, HIDDEN), const_spec),                         # cos
            pl.BlockSpec((R, HIDDEN), const_spec),                         # sin
            pl.BlockSpec((HIDDEN, HIDDEN), const_spec),                    # rotate_half perm
            pl.BlockSpec((R, R), const_spec),                              # causal mask
            pl.BlockSpec((1, HIDDEN), const_spec),                         # final norm
            pl.BlockSpec((HIDDEN, VOCAB), const_spec),                     # lm_head
        ],
        out_specs=pl.BlockSpec((R, VOCAB), const_spec),
        scratch_shapes=[pltpu.VMEM((R, HIDDEN), jnp.float32)],             # residual stream
        compiler_params=pltpu.CompilerParams(
            dimension_semantics=("arbitrary",)),
    )(tok_col, params["embed"], params["attn_norm"], params["mlp_norm"],
      params["wqkv"], params["wo"], params["wgu"], params["wd"],
      cos_full, sin_full, rot, mask, params["final_norm"], params["lm_head"])

    return logits.reshape(B, S, VOCAB)


if __name__ == "__main__":
    key = jax.random.PRNGKey(0)
    pkey, tkey = jax.random.split(key)
    params = init_params(pkey)

    B, S = 2, 8
    tokens = jax.random.randint(tkey, (B, S), 0, VOCAB, dtype=jnp.int32)

    forward = jax.jit(llama_forward)
    logits = forward(tokens, params)
    logits = jax.block_until_ready(logits)

    assert logits.shape == (B, S, VOCAB)
    assert logits.dtype == jnp.float32
    assert bool(jnp.all(jnp.isfinite(logits)))
    # TODO(synk): HF forward also returns past_key_values; only logits are produced here.
    print("KERNEL_OK")
</pallas_src>

<mosaic_0001>
module attributes {stable_mosaic.version = 11 : i64} {
  func.func @_llama_kernel(%arg0: i32, %arg1: memref<16x1xi32, #tpu.memory_space<vmem>>, %arg2: memref<256x64xf32, #tpu.memory_space<vmem>>, %arg3: memref<1x1x64xf32, #tpu.memory_space<vmem>>, %arg4: memref<1x1x64xf32, #tpu.memory_space<vmem>>, %arg5: memref<1x64x192xf32, #tpu.memory_space<vmem>>, %arg6: memref<1x64x64xf32, #tpu.memory_space<vmem>>, %arg7: memref<1x64x256xf32, #tpu.memory_space<vmem>>, %arg8: memref<1x128x64xf32, #tpu.memory_space<vmem>>, %arg9: memref<16x64xf32, #tpu.memory_space<vmem>>, %arg10: memref<16x64xf32, #tpu.memory_space<vmem>>, %arg11: memref<64x64xf32, #tpu.memory_space<vmem>>, %arg12: memref<16x16xf32, #tpu.memory_space<vmem>>, %arg13: memref<1x64xf32, #tpu.memory_space<vmem>>, %arg14: memref<64x256xf32, #tpu.memory_space<vmem>>, %arg15: memref<16x256xf32, #tpu.memory_space<vmem>>, %arg16: memref<16x64xf32, #tpu.memory_space<vmem>>) attributes {dimension_semantics = [#tpu.dimension_semantics<arbitrary>], iteration_bounds = array<i64: 2>, scalar_prefetch = 0 : i64, scratch_operands = 1 : i64, tpu.core_type = #tpu.core_type<tc>, window_params = [{pipeline_mode = #tpu.pipeline_mode<synchronous>, transform_indices = @transform_0, window_bounds = array<i64: 16, 1>}, {pipeline_mode = #tpu.pipeline_mode<synchronous>, transform_indices = @transform_1, window_bounds = array<i64: 256, 64>}, {transform_indices = @transform_2, window_bounds = array<i64: 1, 1, 64>}, {transform_indices = @transform_3, window_bounds = array<i64: 1, 1, 64>}, {transform_indices = @transform_4, window_bounds = array<i64: 1, 64, 192>}, {transform_indices = @transform_5, window_bounds = array<i64: 1, 64, 64>}, {transform_indices = @transform_6, window_bounds = array<i64: 1, 64, 256>}, {transform_indices = @transform_7, window_bounds = array<i64: 1, 128, 64>}, {pipeline_mode = #tpu.pipeline_mode<synchronous>, transform_indices = @transform_8, window_bounds = array<i64: 16, 64>}, {pipeline_mode = #tpu.pipeline_mode<synchronous>, transform_indices = @transform_9, window_bounds = array<i64: 16, 64>}, {pipeline_mode = #tpu.pipeline_mode<synchronous>, transform_indices = @transform_10, window_bounds = array<i64: 64, 64>}, {pipeline_mode = #tpu.pipeline_mode<synchronous>, transform_indices = @transform_11, window_bounds = array<i64: 16, 16>}, {pipeline_mode = #tpu.pipeline_mode<synchronous>, transform_indices = @transform_12, window_bounds = array<i64: 1, 64>}, {pipeline_mode = #tpu.pipeline_mode<synchronous>, transform_indices = @transform_13, window_bounds = array<i64: 64, 256>}, {pipeline_mode = #tpu.pipeline_mode<synchronous>, transform_indices = @transform_14, window_bounds = array<i64: 16, 256>}]} {
    %c0_i32 = arith.constant 0 : i32
    %0 = arith.cmpi eq, %arg0, %c0_i32 : i32
    %1 = arith.extui %0 : i1 to i32
    %c0_i32_0 = arith.constant 0 : i32
    %2 = arith.cmpi ne, %1, %c0_i32_0 : i32
    scf.if %2 {
      %c0_67 = arith.constant 0 : index
      %c0_68 = arith.constant 0 : index
      %158 = vector.load %arg1[%c0_67, %c0_68] : memref<16x1xi32, #tpu.memory_space<vmem>>, vector<16x1xi32>
      %159 = tpu.iota {dimensions = array<i32: 1>} : vector<16x256xi32>
      %160 = vector.broadcast %158 : vector<16x1xi32> to vector<16x256xi32>
      %161 = arith.cmpi eq, %159, %160 : vector<16x256xi32>
      %cst_69 = arith.constant 1.000000e+00 : f32
      %cst_70 = arith.constant 0.000000e+00 : f32
      %162 = vector.broadcast %cst_69 : f32 to vector<16x256xf32>
      %163 = vector.broadcast %cst_70 : f32 to vector<16x256xf32>
      %164 = arith.select %161, %162, %163 : vector<16x256xi1>, vector<16x256xf32>
      %c0_71 = arith.constant 0 : index
      %c0_72 = arith.constant 0 : index
      %165 = vector.load %arg2[%c0_71, %c0_72] : memref<256x64xf32, #tpu.memory_space<vmem>>, vector<256x64xf32>
      %cst_73 = arith.constant dense<0.000000e+00> : vector<16x64xf32>
      %166 = tpu.matmul %164, %165, %cst_73 {dimension_numbers = #tpu.dot_dimension_numbers<[1], [0], [0], [1], [0, 0, 1, 1], [], []>} : vector<16x256xf32>, vector<256x64xf32>, vector<16x64xf32> -> vector<16x64xf32>
      %c0_74 = arith.constant 0 : index
      %c0_75 = arith.constant 0 : index
      %167 = vector.load %arg16[%c0_74, %c0_75] : memref<16x64xf32, #tpu.memory_space<vmem>>, vector<16x64xf32>
      tpu.vector_store %arg16[%c0_74, %c0_75], %166 {strides = array<i32>} : memref<16x64xf32, #tpu.memory_space<vmem>>, vector<16x64xf32>,
    } else {
    }
    %c0 = arith.constant 0 : index
    %c0_1 = arith.constant 0 : index
    %3 = vector.load %arg16[%c0, %c0_1] : memref<16x64xf32, #tpu.memory_space<vmem>>, vector<16x64xf32>
    %c0_2 = arith.constant 0 : index
    %c0_3 = arith.constant 0 : index
    %4 = vector.load %arg9[%c0_2, %c0_3] : memref<16x64xf32, #tpu.memory_space<vmem>>, vector<16x64xf32>
    %c0_4 = arith.constant 0 : index
    %c0_5 = arith.constant 0 : index
    %5 = vector.load %arg10[%c0_4, %c0_5] : memref<16x64xf32, #tpu.memory_space<vmem>>, vector<16x64xf32>
    %c0_6 = arith.constant 0 : index
    %c0_7 = arith.constant 0 : index
    %6 = vector.load %arg11[%c0_6, %c0_7] : memref<64x64xf32, #tpu.memory_space<vmem>>, vector<64x64xf32>
    %c0_8 = arith.constant 0 : index
    %c0_9 = arith.constant 0 : index
    %7 = vector.load %arg12[%c0_8, %c0_9] : memref<16x16xf32, #tpu.memory_space<vmem>>, vector<16x16xf32>
    %c0_10 = arith.constant 0 : index
    %c0_11 = arith.constant 0 : index
    %c0_12 = arith.constant 0 : index
    %8 = vector.load %arg6[%c0_10, %c0_11, %c0_12] : memref<1x64x64xf32, #tpu.memory_space<vmem>>, vector<1x64x64xf32>
    %9 = vector.shape_cast %8 : vector<1x64x64xf32> to vector<64x64xf32>
    %c0_13 = arith.constant 0 : index
    %c0_14 = arith.constant 0 : index
    %c0_15 = arith.constant 0 : index
    %10 = vector.load %arg3[%c0_13, %c0_14, %c0_15] : memref<1x1x64xf32, #tpu.memory_space<vmem>>, vector<1x1x64xf32>
    %11 = vector.shape_cast %10 : vector<1x1x64xf32> to vector<1x64xf32>
    %12 = arith.mulf %3, %3 : vector<16x64xf32>
    %cst = arith.constant dense<0.000000e+00> : vector<16xf32>
    %13 = vector.multi_reduction <add>, %12, %cst [1] : vector<16x64xf32> to vector<16xf32>
    %14 = vector.shape_cast %13 : vector<16xf32> to vector<16x1xf32>
    %cst_16 = arith.constant 1.562500e-02 : f32
    %15 = vector.broadcast %cst_16 : f32 to vector<16x1xf32>
    %16 = arith.mulf %14, %15 : vector<16x1xf32>
    %cst_17 = arith.constant 9.99999997E-7 : f32
    %17 = vector.broadcast %cst_17 : f32 to vector<16x1xf32>
    %18 = arith.addf %16, %17 : vector<16x1xf32>
    %19 = math.rsqrt %18 : vector<16x1xf32>
    %20 = vector.broadcast %19 : vector<16x1xf32> to vector<16x64xf32>
    %21 = arith.mulf %3, %20 : vector<16x64xf32>
    %22 = vector.broadcast %11 : vector<1x64xf32> to vector<16x64xf32>
    %23 = arith.mulf %21, %22 : vector<16x64xf32>
    %c0_18 = arith.constant 0 : index
    %c0_19 = arith.constant 0 : index
    %c0_20 = arith.constant 0 : index
    %24 = vector.load %arg5[%c0_18, %c0_19, %c0_20] : memref<1x64x192xf32, #tpu.memory_space<vmem>>, vector<1x64x192xf32>
    %25 = vector.shape_cast %24 : vector<1x64x192xf32> to vector<64x192xf32>
    %cst_21 = arith.constant dense<0.000000e+00> : vector<16x192xf32>
    %26 = tpu.matmul %23, %25, %cst_21 {dimension_numbers = #tpu.dot_dimension_numbers<[1], [0], [0], [1], [0, 0, 1, 1], [], []>} : vector<16x64xf32>, vector<64x192xf32>, vector<16x192xf32> -> vector<16x192xf32>
    %27 = vector.extract_strided_slice %26 {offsets = [0, 0], sizes = [16, 64], strides = [1, 1]} : vector<16x192xf32> to vector<16x64xf32>
    %28 = vector.extract_strided_slice %26 {offsets = [0, 64], sizes = [16, 64], strides = [1, 1]} : vector<16x192xf32> to vector<16x64xf32>
    %29 = vector.extract_strided_slice %26 {offsets = [0, 128], sizes = [16, 64], strides = [1, 1]} : vector<16x192xf32> to vector<16x64xf32>
    %30 = arith.mulf %27, %4 : vector<16x64xf32>
    %cst_22 = arith.constant dense<0.000000e+00> : vector<16x64xf32>
    %31 = tpu.matmul %27, %6, %cst_22 {dimension_numbers = #tpu.dot_dimension_numbers<[1], [0], [0], [1], [0, 0, 1, 1], [], []>} : vector<16x64xf32>, vector<64x64xf32>, vector<16x64xf32> -> vector<16x64xf32>
    %32 = arith.mulf %31, %5 : vector<16x64xf32>
    %33 = arith.addf %30, %32 : vector<16x64xf32>
    %34 = arith.mulf %28, %4 : vector<16x64xf32>
    %cst_23 = arith.constant dense<0.000000e+00> : vector<16x64xf32>
    %35 = tpu.matmul %28, %6, %cst_23 {dimension_numbers = #tpu.dot_dimension_numbers<[1], [0], [0], [1], [0, 0, 1, 1], [], []>} : vector<16x64xf32>, vector<64x64xf32>, vector<16x64xf32> -> vector<16x64xf32>
    %36 = arith.mulf %35, %5 : vector<16x64xf32>
    %37 = arith.addf %34, %36 : vector<16x64xf32>
    %cst_24 = arith.constant 0.000000e+00 : f32
    %38 = vector.broadcast %cst_24 : f32 to vector<16x64xf32>
    %39 = vector.extract_strided_slice %33 {offsets = [0, 0], sizes = [16, 16], strides = [1, 1]} : vector<16x64xf32> to vector<16x16xf32>
    %40 = vector.extract_strided_slice %37 {offsets = [0, 0], sizes = [16, 16], strides = [1, 1]} : vector<16x64xf32> to vector<16x16xf32>
    %41 = vector.extract_strided_slice %29 {offsets = [0, 0], sizes = [16, 16], strides = [1, 1]} : vector<16x64xf32> to vector<16x16xf32>
    %42 = tpu.transpose %40, [1, 0] : vector<16x16xf32> -> vector<16x16xf32>
    %cst_25 = arith.constant dense<0.000000e+00> : vector<16x16xf32>
    %43 = tpu.matmul %39, %42, %cst_25 {dimension_numbers = #tpu.dot_dimension_numbers<[1], [0], [0], [1], [0, 0, 1, 1], [], []>} : vector<16x16xf32>, vector<16x16xf32>, vector<16x16xf32> -> vector<16x16xf32>
    %cst_26 = arith.constant 2.500000e-01 : f32
    %44 = vector.broadcast %cst_26 : f32 to vector<16x16xf32>
    %45 = arith.mulf %43, %44 : vector<16x16xf32>
    %46 = arith.addf %45, %7 : vector<16x16xf32>
    %cst_27 = arith.constant dense<0xFF800000> : vector<16xf32>
    %47 = vector.multi_reduction <maximumf>, %46, %cst_27 [1] : vector<16x16xf32> to vector<16xf32>
    %48 = vector.shape_cast %47 : vector<16xf32> to vector<16x1xf32>
    %49 = vector.broadcast %48 : vector<16x1xf32> to vector<16x16xf32>
    %50 = arith.subf %46, %49 : vector<16x16xf32>
    %51 = math.exp %50 : vector<16x16xf32>
    %cst_28 = arith.constant dense<0.000000e+00> : vector<16xf32>
    %52 = vector.multi_reduction <add>, %51, %cst_28 [1] : vector<16x16xf32> to vector<16xf32>
    %53 = vector.shape_cast %52 : vector<16xf32> to vector<16x1xf32>
    %54 = vector.broadcast %53 : vector<16x1xf32> to vector<16x16xf32>
    %55 = arith.divf %51, %54 : vector<16x16xf32>
    %cst_29 = arith.constant dense<0.000000e+00> : vector<16x16xf32>
    %56 = tpu.matmul %55, %41, %cst_29 {dimension_numbers = #tpu.dot_dimension_numbers<[1], [0], [0], [1], [0, 0, 1, 1], [], []>} : vector<16x16xf32>, vector<16x16xf32>, vector<16x16xf32> -> vector<16x16xf32>
    %57 = vector.extract_strided_slice %9 {offsets = [0, 0], sizes = [16, 64], strides = [1, 1]} : vector<64x64xf32> to vector<16x64xf32>
    %cst_30 = arith.constant dense<0.000000e+00> : vector<16x64xf32>
    %58 = tpu.matmul %56, %57, %cst_30 {dimension_numbers = #tpu.dot_dimension_numbers<[1], [0], [0], [1], [0, 0, 1, 1], [], []>} : vector<16x16xf32>, vector<16x64xf32>, vector<16x64xf32> -> vector<16x64xf32>
    %59 = arith.addf %38, %58 : vector<16x64xf32>
    %60 = vector.extract_strided_slice %33 {offsets = [0, 16], sizes = [16, 16], strides = [1, 1]} : vector<16x64xf32> to vector<16x16xf32>
    %61 = vector.extract_strided_slice %37 {offsets = [0, 16], sizes = [16, 16], strides = [1, 1]} : vector<16x64xf32> to vector<16x16xf32>
    %62 = vector.extract_strided_slice %29 {offsets = [0, 16], sizes = [16, 16], strides = [1, 1]} : vector<16x64xf32> to vector<16x16xf32>
    %63 = tpu.transpose %61, [1, 0] : vector<16x16xf32> -> vector<16x16xf32>
    %cst_31 = arith.constant dense<0.000000e+00> : vector<16x16xf32>
    %64 = tpu.matmul %60, %63, %cst_31 {dimension_numbers = #tpu.dot_dimension_numbers<[1], [0], [0], [1], [0, 0, 1, 1], [], []>} : vector<16x16xf32>, vector<16x16xf32>, vector<16x16xf32> -> vector<16x16xf32>
    %cst_32 = arith.constant 2.500000e-01 : f32
    %65 = vector.broadcast %cst_32 : f32 to vector<16x16xf32>
    %66 = arith.mulf %64, %65 : vector<16x16xf32>
    %67 = arith.addf %66, %7 : vector<16x16xf32>
    %cst_33 = arith.constant dense<0xFF800000> : vector<16xf32>
    %68 = vector.multi_reduction <maximumf>, %67, %cst_33 [1] : vector<16x16xf32> to vector<16xf32>
    %69 = vector.shape_cast %68 : vector<16xf32> to vector<16x1xf32>
    %70 = vector.broadcast %69 : vector<16x1xf32> to vector<16x16xf32>
    %71 = arith.subf %67, %70 : vector<16x16xf32>
    %72 = math.exp %71 : vector<16x16xf32>
    %cst_34 = arith.constant dense<0.000000e+00> : vector<16xf32>
    %73 = vector.multi_reduction <add>, %72, %cst_34 [1] : vector<16x16xf32> to vector<16xf32>
    %74 = vector.shape_cast %73 : vector<16xf32> to vector<16x1xf32>
    %75 = vector.broadcast %74 : vector<16x1xf32> to vector<16x16xf32>
    %76 = arith.divf %72, %75 : vector<16x16xf32>
    %cst_35 = arith.constant dense<0.000000e+00> : vector<16x16xf32>
    %77 = tpu.matmul %76, %62, %cst_35 {dimension_numbers = #tpu.dot_dimension_numbers<[1], [0], [0], [1], [0, 0, 1, 1], [], []>} : vector<16x16xf32>, vector<16x16xf32>, vector<16x16xf32> -> vector<16x16xf32>
    %78 = vector.extract_strided_slice %9 {offsets = [16, 0], sizes = [16, 64], strides = [1, 1]} : vector<64x64xf32> to vector<16x64xf32>
    %cst_36 = arith.constant dense<0.000000e+00> : vector<16x64xf32>
    %79 = tpu.matmul %77, %78, %cst_36 {dimension_numbers = #tpu.dot_dimension_numbers<[1], [0], [0], [1], [0, 0, 1, 1], [], []>} : vector<16x16xf32>, vector<16x64xf32>, vector<16x64xf32> -> vector<16x64xf32>
    %80 = arith.addf %59, %79 : vector<16x64xf32>
    %81 = vector.extract_strided_slice %33 {offsets = [0, 32], sizes = [16, 16], strides = [1, 1]} : vector<16x64xf32> to vector<16x16xf32>
    %82 = vector.extract_strided_slice %37 {offsets = [0, 32], sizes = [16, 16], strides = [1, 1]} : vector<16x64xf32> to vector<16x16xf32>
    %83 = vector.extract_strided_slice %29 {offsets = [0, 32], sizes = [16, 16], strides = [1, 1]} : vector<16x64xf32> to vector<16x16xf32>
    %84 = tpu.transpose %82, [1, 0] : vector<16x16xf32> -> vector<16x16xf32>
    %cst_37 = arith.constant dense<0.000000e+00> : vector<16x16xf32>
    %85 = tpu.matmul %81, %84, %cst_37 {dimension_numbers = #tpu.dot_dimension_numbers<[1], [0], [0], [1], [0, 0, 1, 1], [], []>} : vector<16x16xf32>, vector<16x16xf32>, vector<16x16xf32> -> vector<16x16xf32>
    %cst_38 = arith.constant 2.500000e-01 : f32
    %86 = vector.broadcast %cst_38 : f32 to vector<16x16xf32>
    %87 = arith.mulf %85, %86 : vector<16x16xf32>
    %88 = arith.addf %87, %7 : vector<16x16xf32>
    %cst_39 = arith.constant dense<0xFF800000> : vector<16xf32>
    %89 = vector.multi_reduction <maximumf>, %88, %cst_39 [1] : vector<16x16xf32> to vector<16xf32>
    %90 = vector.shape_cast %89 : vector<16xf32> to vector<16x1xf32>
    %91 = vector.broadcast %90 : vector<16x1xf32> to vector<16x16xf32>
    %92 = arith.subf %88, %91 : vector<16x16xf32>
    %93 = math.exp %92 : vector<16x16xf32>
    %cst_40 = arith.constant dense<0.000000e+00> : vector<16xf32>
    %94 = vector.multi_reduction <add>, %93, %cst_40 [1] : vector<16x16xf32> to vector<16xf32>
    %95 = vector.shape_cast %94 : vector<16xf32> to vector<16x1xf32>
    %96 = vector.broadcast %95 : vector<16x1xf32> to vector<16x16xf32>
    %97 = arith.divf %93, %96 : vector<16x16xf32>
    %cst_41 = arith.constant dense<0.000000e+00> : vector<16x16xf32>
    %98 = tpu.matmul %97, %83, %cst_41 {dimension_numbers = #tpu.dot_dimension_numbers<[1], [0], [0], [1], [0, 0, 1, 1], [], []>} : vector<16x16xf32>, vector<16x16xf32>, vector<16x16xf32> -> vector<16x16xf32>
    %99 = vector.extract_strided_slice %9 {offsets = [32, 0], sizes = [16, 64], strides = [1, 1]} : vector<64x64xf32> to vector<16x64xf32>
    %cst_42 = arith.constant dense<0.000000e+00> : vector<16x64xf32>
    %100 = tpu.matmul %98, %99, %cst_42 {dimension_numbers = #tpu.dot_dimension_numbers<[1], [0], [0], [1], [0, 0, 1, 1], [], []>} : vector<16x16xf32>, vector<16x64xf32>, vector<16x64xf32> -> vector<16x64xf32>
    %101 = arith.addf %80, %100 : vector<16x64xf32>
    %102 = vector.extract_strided_slice %33 {offsets = [0, 48], sizes = [16, 16], strides = [1, 1]} : vector<16x64xf32> to vector<16x16xf32>
    %103 = vector.extract_strided_slice %37 {offsets = [0, 48], sizes = [16, 16], strides = [1, 1]} : vector<16x64xf32> to vector<16x16xf32>
    %104 = vector.extract_strided_slice %29 {offsets = [0, 48], sizes = [16, 16], strides = [1, 1]} : vector<16x64xf32> to vector<16x16xf32>
    %105 = tpu.transpose %103, [1, 0] : vector<16x16xf32> -> vector<16x16xf32>
    %cst_43 = arith.constant dense<0.000000e+00> : vector<16x16xf32>
    %106 = tpu.matmul %102, %105, %cst_43 {dimension_numbers = #tpu.dot_dimension_numbers<[1], [0], [0], [1], [0, 0, 1, 1], [], []>} : vector<16x16xf32>, vector<16x16xf32>, vector<16x16xf32> -> vector<16x16xf32>
    %cst_44 = arith.constant 2.500000e-01 : f32
    %107 = vector.broadcast %cst_44 : f32 to vector<16x16xf32>
    %108 = arith.mulf %106, %107 : vector<16x16xf32>
    %109 = arith.addf %108, %7 : vector<16x16xf32>
    %cst_45 = arith.constant dense<0xFF800000> : vector<16xf32>
    %110 = vector.multi_reduction <maximumf>, %109, %cst_45 [1] : vector<16x16xf32> to vector<16xf32>
    %111 = vector.shape_cast %110 : vector<16xf32> to vector<16x1xf32>
    %112 = vector.broadcast %111 : vector<16x1xf32> to vector<16x16xf32>
    %113 = arith.subf %109, %112 : vector<16x16xf32>
    %114 = math.exp %113 : vector<16x16xf32>
    %cst_46 = arith.constant dense<0.000000e+00> : vector<16xf32>
    %115 = vector.multi_reduction <add>, %114, %cst_46 [1] : vector<16x16xf32> to vector<16xf32>
    %116 = vector.shape_cast %115 : vector<16xf32> to vector<16x1xf32>
    %117 = vector.broadcast %116 : vector<16x1xf32> to vector<16x16xf32>
    %118 = arith.divf %114, %117 : vector<16x16xf32>
    %cst_47 = arith.constant dense<0.000000e+00> : vector<16x16xf32>
    %119 = tpu.matmul %118, %104, %cst_47 {dimension_numbers = #tpu.dot_dimension_numbers<[1], [0], [0], [1], [0, 0, 1, 1], [], []>} : vector<16x16xf32>, vector<16x16xf32>, vector<16x16xf32> -> vector<16x16xf32>
    %120 = vector.extract_strided_slice %9 {offsets = [48, 0], sizes = [16, 64], strides = [1, 1]} : vector<64x64xf32> to vector<16x64xf32>
    %cst_48 = arith.constant dense<0.000000e+00> : vector<16x64xf32>
    %121 = tpu.matmul %119, %120, %cst_48 {dimension_numbers = #tpu.dot_dimension_numbers<[1], [0], [0], [1], [0, 0, 1, 1], [], []>} : vector<16x16xf32>, vector<16x64xf32>, vector<16x64xf32> -> vector<16x64xf32>
    %122 = arith.addf %101, %121 : vector<16x64xf32>
    %123 = arith.addf %3, %122 : vector<16x64xf32>
    %c0_49 = arith.constant 0 : index
    %c0_50 = arith.constant 0 : index
    %c0_51 = arith.constant 0 : index
    %124 = vector.load %arg4[%c0_49, %c0_50, %c0_51] : memref<1x1x64xf32, #tpu.memory_space<vmem>>, vector<1x1x64xf32>
    %125 = vector.shape_cast %124 : vector<1x1x64xf32> to vector<1x64xf32>
    %126 = arith.mulf %123, %123 : vector<16x64xf32>
    %cst_52 = arith.constant dense<0.000000e+00> : vector<16xf32>
    %127 = vector.multi_reduction <add>, %126, %cst_52 [1] : vector<16x64xf32> to vector<16xf32>
    %128 = vector.shape_cast %127 : vector<16xf32> to vector<16x1xf32>
    %cst_53 = arith.constant 1.562500e-02 : f32
    %129 = vector.broadcast %cst_53 : f32 to vector<16x1xf32>
    %130 = arith.mulf %128, %129 : vector<16x1xf32>
    %cst_54 = arith.constant 9.99999997E-7 : f32
    %131 = vector.broadcast %cst_54 : f32 to vector<16x1xf32>
    %132 = arith.addf %130, %131 : vector<16x1xf32>
    %133 = math.rsqrt %132 : vector<16x1xf32>
    %134 = vector.broadcast %133 : vector<16x1xf32> to vector<16x64xf32>
    %135 = arith.mulf %123, %134 : vector<16x64xf32>
    %136 = vector.broadcast %125 : vector<1x64xf32> to vector<16x64xf32>
    %137 = arith.mulf %135, %136 : vector<16x64xf32>
    %c0_55 = arith.constant 0 : index
    %c0_56 = arith.constant 0 : index
    %c0_57 = arith.constant 0 : index
    %138 = vector.load %arg7[%c0_55, %c0_56, %c0_57] : memref<1x64x256xf32, #tpu.memory_space<vmem>>, vector<1x64x256xf32>
    %139 = vector.shape_cast %138 : vector<1x64x256xf32> to vector<64x256xf32>
    %cst_58 = arith.constant dense<0.000000e+00> : vector<16x256xf32>
    %140 = tpu.matmul %137, %139, %cst_58 {dimension_numbers = #tpu.dot_dimension_numbers<[1], [0], [0], [1], [0, 0, 1, 1], [], []>} : vector<16x64xf32>, vector<64x256xf32>, vector<16x256xf32> -> vector<16x256xf32>
    %141 = vector.extract_strided_slice %140 {offsets = [0, 0], sizes = [16, 128], strides = [1, 1]} : vector<16x256xf32> to vector<16x128xf32>
    %142 = vector.extract_strided_slice %140 {offsets = [0, 128], sizes = [16, 128], strides = [1, 1]} : vector<16x256xf32> to vector<16x128xf32>
    %143 = arith.negf %141 : vector<16x128xf32>
    %144 = math.exp %143 : vector<16x128xf32>
    %cst_59 = arith.constant 1.000000e+00 : f32
    %145 = vector.broadcast %cst_59 : f32 to vector<16x128xf32>
    %146 = arith.addf %145, %144 : vector<16x128xf32>
    %147 = arith.divf %145, %146 : vector<16x128xf32>
    %148 = arith.mulf %141, %147 : vector<16x128xf32>
    %149 = arith.mulf %148, %142 : vector<16x128xf32>
    %c0_60 = arith.constant 0 : index
    %c0_61 = arith.constant 0 : index
    %c0_62 = arith.constant 0 : index
    %150 = vector.load %arg8[%c0_60, %c0_61, %c0_62] : memref<1x128x64xf32, #tpu.memory_space<vmem>>, vector<1x128x64xf32>
    %151 = vector.shape_cast %150 : vector<1x128x64xf32> to vector<128x64xf32>
    %cst_63 = arith.constant dense<0.000000e+00> : vector<16x64xf32>
    %152 = tpu.matmul %149, %151, %cst_63 {dimension_numbers = #tpu.dot_dimension_numbers<[1], [0], [0], [1], [0, 0, 1, 1], [], []>} : vector<16x128xf32>, vector<128x64xf32>, vector<16x64xf32> -> vector<16x64xf32>
    %153 = arith.addf %123, %152 : vector<16x64xf32>
    %c0_64 = arith.constant 0 : index
    %c0_65 = arith.constant 0 : index
    %154 = vector.load %arg16[%c0_64, %c0_65] : memref<16x64xf32, #tpu.memory_space<vmem>>, vector<16x64xf32>
    tpu.vector_store %arg16[%c0_64, %c0_65], %153 {strides = array<i32>} : memref<16x64xf32, #tpu.memory_space<vmem>>, vector<16x64xf32>,
    %c1_i32 = arith.constant 1 : i32
    %155 = arith.cmpi eq, %arg0, %c1_i32 : i32
    %156 = arith.extui %155 : i1 to i32
    %c0_i32_66 = arith.constant 0 : i32
    %157 = arith.cmpi ne, %156, %c0_i32_66 : i32
    scf.if %157 {
      %c0_67 = arith.constant 0 : index
      %c0_68 = arith.constant 0 : index
      %158 = vector.load %arg13[%c0_67, %c0_68] : memref<1x64xf32, #tpu.memory_space<vmem>>, vector<1x64xf32>
      %159 = arith.mulf %153, %153 : vector<16x64xf32>
      %cst_69 = arith.constant dense<0.000000e+00> : vector<16xf32>
      %160 = vector.multi_reduction <add>, %159, %cst_69 [1] : vector<16x64xf32> to vector<16xf32>
      %161 = vector.shape_cast %160 : vector<16xf32> to vector<16x1xf32>
      %cst_70 = arith.constant 1.562500e-02 : f32
      %162 = vector.broadcast %cst_70 : f32 to vector<16x1xf32>
      %163 = arith.mulf %161, %162 : vector<16x1xf32>
      %cst_71 = arith.constant 9.99999997E-7 : f32
      %164 = vector.broadcast %cst_71 : f32 to vector<16x1xf32>
      %165 = arith.addf %163, %164 : vector<16x1xf32>
      %166 = math.rsqrt %165 : vector<16x1xf32>
      %167 = vector.broadcast %166 : vector<16x1xf32> to vector<16x64xf32>
      %168 = arith.mulf %153, %167 : vector<16x64xf32>
      %169 = vector.broadcast %158 : vector<1x64xf32> to vector<16x64xf32>
      %170 = arith.mulf %168, %169 : vector<16x64xf32>
      %c0_72 = arith.constant 0 : index
      %c0_73 = arith.constant 0 : index
      %171 = vector.load %arg14[%c0_72, %c0_73] : memref<64x256xf32, #tpu.memory_space<vmem>>, vector<64x256xf32>
      %cst_74 = arith.constant dense<0.000000e+00> : vector<16x256xf32>
      %172 = tpu.matmul %170, %171, %cst_74 {dimension_numbers = #tpu.dot_dimension_numbers<[1], [0], [0], [1], [0, 0, 1, 1], [], []>} : vector<16x64xf32>, vector<64x256xf32>, vector<16x256xf32> -> vector<16x256xf32>
      %c0_75 = arith.constant 0 : index
      %c0_76 = arith.constant 0 : index
      %173 = vector.load %arg15[%c0_75, %c0_76] : memref<16x256xf32, #tpu.memory_space<vmem>>, vector<16x256xf32>
      tpu.vector_store %arg15[%c0_75, %c0_76], %172 {strides = array<i32>} : memref<16x256xf32, #tpu.memory_space<vmem>>, vector<16x256xf32>,
    } else {
    }
    return
  }
  func.func @transform_0(%arg0: i32) -> (i32, i32) {
    %c0_i32 = arith.constant 0 : i32
    %c0_i32_0 = arith.constant 0 : i32
    %c0_i32_1 = arith.constant 0 : i32
    return %c0_i32, %c0_i32_0 : i32, i32
  }
  func.func @transform_1(%arg0: i32) -> (i32, i32) {
    %c0_i32 = arith.constant 0 : i32
    %c0_i32_0 = arith.constant 0 : i32
    %c0_i32_1 = arith.constant 0 : i32
    return %c0_i32, %c0_i32_0 : i32, i32
  }
  func.func @transform_2(%arg0: i32) -> (i32, i32, i32) {
    %c0_i32 = arith.constant 0 : i32
    %c0_i32_0 = arith.constant 0 : i32
    %c0_i32_1 = arith.constant 0 : i32
    return %arg0, %c0_i32, %c0_i32_0 : i32, i32, i32
  }
  func.func @transform_3(%arg0: i32) -> (i32, i32, i32) {
    %c0_i32 = arith.constant 0 : i32
    %c0_i32_0 = arith.constant 0 : i32
    %c0_i32_1 = arith.constant 0 : i32
    return %arg0, %c0_i32, %c0_i32_0 : i32, i32, i32
  }
  func.func @transform_4(%arg0: i32) -> (i32, i32, i32) {
    %c0_i32 = arith.constant 0 : i32
    %c0_i32_0 = arith.constant 0 : i32
    %c0_i32_1 = arith.constant 0 : i32
    return %arg0, %c0_i32, %c0_i32_0 : i32, i32, i32
  }
  func.func @transform_5(%arg0: i32) -> (i32, i32, i32) {
    %c0_i32 = arith.constant 0 : i32
    %c0_i32_0 = arith.constant 0 : i32
    %c0_i32_1 = arith.constant 0 : i32
    return %arg0, %c0_i32, %c0_i32_0 : i32, i32, i32
  }
  func.func @transform_6(%arg0: i32) -> (i32, i32, i32) {
    %c0_i32 = arith.constant 0 : i32
    %c0_i32_0 = arith.constant 0 : i32
    %c0_i32_1 = arith.constant 0 : i32
    return %arg0, %c0_i32, %c0_i32_0 : i32, i32, i32
  }
  func.func @transform_7(%arg0: i32) -> (i32, i32, i32) {
    %c0_i32 = arith.constant 0 : i32
    %c0_i32_0 = arith.constant 0 : i32
    %c0_i32_1 = arith.constant 0 : i32
    return %arg0, %c0_i32, %c0_i32_0 : i32, i32, i32
  }
  func.func @transform_8(%arg0: i32) -> (i32, i32) {
    %c0_i32 = arith.constant 0 : i32
    %c0_i32_0 = arith.constant 0 : i32
    %c0_i32_1 = arith.constant 0 : i32
    return %c0_i32, %c0_i32_0 : i32, i32
  }
  func.func @transform_9(%arg0: i32) -> (i32, i32) {
    %c0_i32 = arith.constant 0 : i32
    %c0_i32_0 = arith.constant 0 : i32
    %c0_i32_1 = arith.constant 0 : i32
    return %c0_i32, %c0_i32_0 : i32, i32
  }
  func.func @transform_10(%arg0: i32) -> (i32, i32) {
    %c0_i32 = arith.constant 0 : i32
    %c0_i32_0 = arith.constant 0 : i32
    %c0_i32_1 = arith.constant 0 : i32
    return %c0_i32, %c0_i32_0 : i32, i32
  }
  func.func @transform_11(%arg0: i32) -> (i32, i32) {
    %c0_i32 = arith.constant 0 : i32
    %c0_i32_0 = arith.constant 0 : i32
    %c0_i32_1 = arith.constant 0 : i32
    return %c0_i32, %c0_i32_0 : i32, i32
  }
  func.func @transform_12(%arg0: i32) -> (i32, i32) {
    %c0_i32 = arith.constant 0 : i32
    %c0_i32_0 = arith.constant 0 : i32
    %c0_i32_1 = arith.constant 0 : i32
    return %c0_i32, %c0_i32_0 : i32, i32
  }
  func.func @transform_13(%arg0: i32) -> (i32, i32) {
    %c0_i32 = arith.constant 0 : i32
    %c0_i32_0 = arith.constant 0 : i32
    %c0_i32_1 = arith.constant 0 : i32
    return %c0_i32, %c0_i32_0 : i32, i32
  }
  func.func @transform_14(%arg0: i32) -> (i32, i32) {
    %c0_i32 = arith.constant 0 : i32
    %c0_i32_0 = arith.constant 0 : i32
    %c0_i32_1 = arith.constant 0 : i32
    return %c0_i32, %c0_i32_0 : i32, i32
  }
}

</mosaic_0001>

<bundles_post_ra>
// kernel: tile.18
= control target key start
LH: loop header
LB: loop body
LE: loop exit
PB: predicated region body
PF: predicated region fallthrough
CT: control target
= control target key end

     0   :  { %s154_s0 = inlined_call_operand.vmem [shape: f32[8,16], index: 0, kind: input, shape index: {}]   ;;  %s155_s1 = inlined_call_operand.vmem [shape: f32[2,8,4,16], index: 1, kind: output, shape index: {}]  }
   0x1   :  { %v4_v0 = vld [vmem:[%s154_s0] ss:$0 sm:$0xff]  ;;  %v51_v1 = vld [vmem:[%s154_s0 + $0x1] ss:$0 sm:$0xff]  ;;  %v54_v2 = vld [vmem:[%s154_s0 + $0x2] ss:$0 sm:$0xff] }
   0x2   :  { %5 = vst [vmem:[%s155_s1] sm:$0xf] %v4_v0  ;;  %v57_v3 = vld [vmem:[%s154_s0 + $0x3] ss:$0 sm:$0xff]  ;;  %v60_v4 = vld [vmem:[%s154_s0 + $0x4] ss:$0 sm:$0xff] }
   0x3   :  { %50 = vst [vmem:[%s155_s1 + $0x20] sm:$0xf] %v4_v0  ;;  %v63_v5 = vld [vmem:[%s154_s0 + $0x5] ss:$0 sm:$0xff]  ;;  %v66_v6 = vld [vmem:[%s154_s0 + $0x6] ss:$0 sm:$0xff] }
   0x4   :  { %52 = vst [vmem:[%s155_s1 + $0x4] sm:$0xf] %v51_v1  ;;  %v69_v7 = vld [vmem:[%s154_s0 + $0x7] ss:$0 sm:$0xff] }
   0x5   :  { %53 = vst [vmem:[%s155_s1 + $0x24] sm:$0xf] %v51_v1 }
   0x6   :  { %55 = vst [vmem:[%s155_s1 + $0x8] sm:$0xf] %v54_v2 }
   0x7   :  { %56 = vst [vmem:[%s155_s1 + $0x28] sm:$0xf] %v54_v2 }
   0x8   :  { %58 = vst [vmem:[%s155_s1 + $0xc] sm:$0xf] %v57_v3 }
   0x9   :  { %59 = vst [vmem:[%s155_s1 + $0x2c] sm:$0xf] %v57_v3 }
   0xa   :  { %61 = vst [vmem:[%s155_s1 + $0x10] sm:$0xf] %v60_v4 }
   0xb   :  { %62 = vst [vmem:[%s155_s1 + $0x30] sm:$0xf] %v60_v4 }
   0xc   :  { %64 = vst [vmem:[%s155_s1 + $0x14] sm:$0xf] %v63_v5 }
   0xd   :  { %65 = vst [vmem:[%s155_s1 + $0x34] sm:$0xf] %v63_v5 }
   0xe   :  { %67 = vst [vmem:[%s155_s1 + $0x18] sm:$0xf] %v66_v6 }
   0xf   :  { %68 = vst [vmem:[%s155_s1 + $0x38] sm:$0xf] %v66_v6 }
  0x10   :  { %70 = vst [vmem:[%s155_s1 + $0x1c] sm:$0xf] %v69_v7 }
  0x11   :  { %71 = vst [vmem:[%s155_s1 + $0x3c] sm:$0xf] %v69_v7 }

// kernel: tile.19
= control target key start
LH: loop header
LB: loop body
LE: loop exit
PB: predicated region body
PF: predicated region fallthrough
CT: control target
= control target key end

     0   :  { %vm68_vm0 = vcmask 1047556   ;;  %s167_s9 = smov 32   ;;  %s168_s10 = smov 16   ;;  %vm70_vm1 = vcmask 130048   ;;  %vm89_vm2 = vcmask 523648   ;;  %vm110_vm3 = vcmask 392448   ;;  %s259_s0 = inlined_call_operand.vmem [shape: f32[2,8,4,16], index: 0, kind: input, shape index: {}]   ;;  %s260_s1 = inlined_call_operand.vmem [shape: f32[16,64], index: 1, kind: output, shape index: {}]  }
   0x1   :  { %v152_v0 = vld [vmem:[%s259_s0 + $0x1c] sm:$0xf]  ;;  %v153_v1 = vld [vmem:[%s259_s0 + $0x18] sm:$0xf]  ;;  %v154_v2 = vld [vmem:[%s259_s0 + $0x14] sm:$0xf] }
   0x2   :  { %39 = vst [vmem:[#allocation0 + $0x38] sm:$0xf] %v152_v0  ;;  %v155_v3 = vld [vmem:[%s259_s0 + $0x10] sm:$0xf]  ;;  %v156_v4 = vld [vmem:[%s259_s0 + $0xc] sm:$0xf] }
   0x3   :  { %43 = vst [vmem:[#allocation0 + $0x30] sm:$0xf] %v153_v1  ;;  %v157_v5 = vld [vmem:[%s259_s0 + $0x8] sm:$0xf]  ;;  %v158_v6 = vld [vmem:[%s259_s0 + $0x4] sm:$0xf] }
   0x4   :  { %47 = vst [vmem:[#allocation0 + $0x28] sm:$0xf] %v154_v2  ;;  %v64_v7 = vld [vmem:[%s259_s0] sm:$0xf]  ;;  %v144_v8 = vld [vmem:[%s259_s0 + $0x3c] sm:$0xf] }
   0x5   :  { %51 = vst [vmem:[#allocation0 + $0x20] sm:$0xf] %v155_v3  ;;  %v145_v9 = vld [vmem:[%s259_s0 + $0x38] sm:$0xf]  ;;  %v146_v10 = vld [vmem:[%s259_s0 + $0x34] sm:$0xf] }
   0x6   :  { %55 = vst [vmem:[#allocation0 + $0x18] sm:$0xf] %v156_v4  ;;  %v147_v11 = vld [vmem:[%s259_s0 + $0x30] sm:$0xf]  ;;  %v148_v12 = vld [vmem:[%s259_s0 + $0x2c] sm:$0xf] }
   0x7   :  { %59 = vst [vmem:[#allocation0 + $0x10] sm:$0xf] %v157_v5  ;;  %v149_v13 = vld [vmem:[%s259_s0 + $0x28] sm:$0xf]  ;;  %v150_v15 = vld [vmem:[%s259_s0 + $0x24] sm:$0xf] }
   0x8   :  { %63 = vst [vmem:[#allocation0 + $0x8] sm:$0xf] %v158_v6  ;;  %v151_v17 = vld [vmem:[%s259_s0 + $0x20] sm:$0xf]  ;;  %s166_s0 = smov 48   ;;  %vm131_vm4 = vcmask 261248  }
   0x9   :  { %65 = vst [vmem:[#allocation0] sm:$0xf] %v64_v7 }
   0xa   :  { %7 = vst [vmem:[#allocation0 + $0x78] sm:$0xf] %v144_v8 }
   0xb   :  { %11 = vst [vmem:[#allocation0 + $0x70] sm:$0xf] %v145_v9 }
   0xc   :  { %v84_v14 = vld [vmem:[#allocation0 + $0x3] ss:$8 sm:$0xf0]   ;;  %15 = vst [vmem:[#allocation0 + $0x68] sm:$0xf] %v146_v10 }
   0xd   :  { %v105_v16 = vld [vmem:[#allocation0 + $0x2] ss:$8 sm:$0xf0]   ;;  %19 = vst [vmem:[#allocation0 + $0x60] sm:$0xf] %v147_v11 }
   0xe   :  { %23 = vst [vmem:[#allocation0 + $0x58] sm:$0xf] %v148_v12  ;;  %v126_v18 = vld [vmem:[#allocation0 + $0x1] ss:$8 sm:$0xf0]  }
   0xf   :  { %27 = vst [vmem:[#allocation0 + $0x50] sm:$0xf] %v149_v13  ;;  %v67_v35 = vld [vmem:[#allocation0] ss:$8 sm:$0xf0]  }
  0x10   :  { %v82_v19 = vld [vmem:[#allocation0 + $0x3] ss:$8 sm:$0xf]   ;;  %v103_v20 = vld [vmem:[#allocation0 + $0x2] ss:$8 sm:$0xf]  }
  0x11   :  { %v86_v21 = vsel %vm68_vm0, %v84_v14, %v82_v19  ;;  %v107_v22 = vsel %vm68_vm0, %v105_v16, %v103_v20  ;;  %v124_v23 = vld [vmem:[#allocation0 + $0x1] ss:$8 sm:$0xf]   ;;  %31 = vst [vmem:[#allocation0 + $0x48] sm:$0xf] %v150_v15 }
  0x12   :  { %87 = vrot.lane.b32.xlu0 %v86_v21, %s166_s0  ;;  %108 = vrot.lane.b32.xlu1 %v107_v22, %s167_s9  ;;  %v128_v24 = vsel %vm68_vm0, %v126_v18, %v124_v23  ;;  %35 = vst [vmem:[#allocation0 + $0x40] sm:$0xf] %v151_v17  ;;  %v66_v34 = vld [vmem:[#allocation0] ss:$8 sm:$0xf]  }
  0x13   :  { %129 = vrot.lane.b32.xlu2 %v128_v24, %s168_s10  ;;  %v69_v36 = vsel %vm68_vm0, %v67_v35, %v66_v34 }
  0x14   :  { %v94_v25 = vld [vmem:[#allocation0 + $0x43] ss:$8 sm:$0xf0]   ;;  %v115_v26 = vld [vmem:[#allocation0 + $0x42] ss:$8 sm:$0xf0]  }
  0x15   :  { %v136_v27 = vld [vmem:[#allocation0 + $0x41] ss:$8 sm:$0xf0]   ;;  %71 = vst.msk [vmem:[%s260_s1] sm:$0xff] %vm70_vm1, %v69_v36  }
  0x16   :  { %v75_v38 = vld [vmem:[#allocation0 + $0x40] ss:$8 sm:$0xf0]  }
  0x19   :  { %v92_v28 = vld [vmem:[#allocation0 + $0x43] ss:$8 sm:$0xf]   ;;  %v113_v29 = vld [vmem:[#allocation0 + $0x42] ss:$8 sm:$0xf]  }
  0x1a   :  { %v96_v30 = vsel %vm68_vm0, %v94_v25, %v92_v28  ;;  %v117_v31 = vsel %vm68_vm0, %v115_v26, %v113_v29  ;;  %v134_v32 = vld [vmem:[#allocation0 + $0x41] ss:$8 sm:$0xf]   ;;  %v73_v37 = vld [vmem:[#allocation0 + $0x40] ss:$8 sm:$0xf]  }
  0x1b   :  { %97 = vrot.lane.b32.xlu0 %v96_v30, %s166_s0  ;;  %118 = vrot.lane.b32.xlu1 %v117_v31, %s167_s9  ;;  %v138_v33 = vsel %vm68_vm0, %v136_v27, %v134_v32  ;;  %v77_v40 = vsel %vm68_vm0, %v75_v38, %v73_v37 }
  0x1c   :  { %139 = vrot.lane.b32.xlu2 %v138_v33, %s168_s10  ;;  %159 = vst.msk [vmem:[%s260_s1 + $0x8] sm:$0xff] %vm70_vm1, %v77_v40  }
  0x6d   :  { %v130_v39 = vpop.permute.xlu2 %129  }
  0x76   :  { %v140_v41 = vpop.permute.xlu2 %139  }
  0x84   :  { %v88_v42 = vpop.permute.xlu0 %87   ;;  %v109_v43 = vpop.permute.xlu1 %108  }
  0x85   :  { %90 = vst.msk [vmem:[%s260_s1] sm:$0xff] %vm89_vm2, %v88_v42  }
  0x86   :  { %111 = vst.msk [vmem:[%s260_s1] sm:$0xff] %vm110_vm3, %v109_v43  }
  0x87   :  { %132 = vst.msk [vmem:[%s260_s1] sm:$0xff] %vm131_vm4, %v130_v39  }
  0x8d   :  { %v98_v44 = vpop.permute.xlu0 %97   ;;  %v119_v45 = vpop.permute.xlu1 %118  }
  0x8e   :  { %160 = vst.msk [vmem:[%s260_s1 + $0x8] sm:$0xff] %vm89_vm2, %v98_v44  }
  0x8f   :  { %161 = vst.msk [vmem:[%s260_s1 + $0x8] sm:$0xff] %vm110_vm3, %v119_v45  }
  0x90   :  { %162 = vst.msk [vmem:[%s260_s1 + $0x8] sm:$0xff] %vm131_vm4, %v140_v41  }

// kernel: llama_forward.1
= control target key start
LH: loop header
LB: loop body
LE: loop exit
PB: predicated region body
PF: predicated region fallthrough
CT: control target
= control target key end

     0   :  { %s2774_s0 = inlined_call_operand.vmem [shape: s32[16,1], index: 0, kind: input, shape index: {}]   ;;  %s2775_s1 = inlined_call_operand.vmem [shape: f32[256,64], index: 1, kind: input, shape index: {}]   ;;  %s2776_s2 = inlined_call_operand.vmem [shape: f32[2,1,64], index: 2, kind: input, shape index: {}]   ;;  %s2777_s3 = inlined_call_operand.vmem [shape: f32[2,1,64], index: 3, kind: input, shape index: {}]   ;;  %s2778_s4 = inlined_call_operand.vmem [shape: f32[2,64,192], index: 4, kind: input, shape index: {}]   ;;  %s2779_s5 = inlined_call_operand.vmem [shape: f32[2,64,64], index: 5, kind: input, shape index: {}]   ;;  %s2780_s6 = inlined_call_operand.vmem [shape: f32[2,64,256], index: 6, kind: input, shape index: {}]   ;;  %s2781_s7 = inlined_call_operand.vmem [shape: f32[2,128,64], index: 7, kind: input, shape index: {}]   ;;  %s2782_s8 = inlined_call_operand.vmem [shape: f32[16,64], index: 8, kind: input, shape index: {}]   ;;  %s2783_s9 = inlined_call_operand.vmem [shape: f32[16,64], index: 9, kind: input, shape index: {}]   ;;  %s2784_s10 = inlined_call_operand.vmem [shape: f32[64,64], index: 10, kind: input, shape index: {}]   ;;  %s2785_s11 = inlined_call_operand.vmem [shape: f32[16,16], index: 11, kind: input, shape index: {}]   ;;  %s2786_s12 = inlined_call_operand.vmem [shape: f32[1,64], index: 12, kind: input, shape index: {}]   ;;  %s2787_s13 = inlined_call_operand.vmem [shape: f32[64,256], index: 13, kind: input, shape index: {}]   ;;  %s2788_s14 = inlined_call_operand.hbm [shape: f32[16,256], index: 14, kind: output, shape index: {}]  }
   0x1   :  { %2790 = sst [smem:[#allocation7_spill]] %s2788_s14 }
   0x2   :  { %19 = vsyncpa [#allocation4], 0  ;;  %s2249_s29 = smov 0  }
   0x3 LB: > { %2791 = sst [smem:[#allocation6_spill]] %s2161_s29  ;;  %s2255_s30 = sadd.s32 4294967295, %s2161_s29   ;;  %s2161_s29 = sphi %s2249_s29, %s25_s29  }
   0x4   : > { %p1906_p0 = scmp.ge.s32.totalorder %s2161_s29, 1  ;;  %p454_p1 = scmp.lt.s32.totalorder %s2161_s29, 3 }
   0x6   : > { %p455_p2 = pnand %p1906_p0, %p454_p1 }
   0x7   : > { %p516_p3 = scmp.lt.s32.totalorder (!%p455_p2), %s2255_s30, 1  ;;  %p1915_p4 = scmp.ne.s32.totalorder (!%p455_p2), %s2255_s30, 0 }
   0x8   : > { %458 = sbr.rel (%p455_p2) target bundleno = 2990 (0xbae), region = 76 }
   0xd   : > { %s2261_s15 = scalar_select %p516_p3, %s2255_s30, 1 }
   0xe   : > { %545 = sbr.rel (%p1915_p4) target bundleno = 274 (0x112), region = 80 }
   0xf   : > { %s521_s21 = scalar_lea.vmem %s2777_s3, %s2261_s15  ;;  %s1975_s22 = sshll.u32 %s2261_s15, 7 }
  0x10   : > { %s1976_s23 = sshll.u32 %s2261_s15, 6  ;;  %s2276_s26 = scalar_lea.vmem %s2778_s4, %s1975_s22 }
  0x11   : > { %s2281_s29 = scalar_lea.vmem %s2779_s5, %s1976_s23  ;;  %s2286_s18 = scalar_lea.vmem %s2780_s6, %s1975_s22 }
  0x12   : > { %s2291_s20 = scalar_lea.vmem %s2781_s7, %s1975_s22 }
  0x13   : > { %v547_v0 = vld [vmem:[%s2774_s0 + $0x8] sm:$0xff]  ;;  %v580_v1 = vld [vmem:[%s2775_s1 + $0x78] sm:$0xff]  ;;  %v2163_v2 = vmov 0   ;;  %v579_v4 = vld [vmem:[%s2775_s1 + $0x70] sm:$0xff]  ;;  %v548_v35 = vlaneseq  ;;  %v2164_v39 = vmov 1.0   ;;  %vm643_vm4 = vcmask 523264  }
  0x14   : > { %2052 = vset.pattern.permute.xlu0 %v2163_v2  ;;  %1979 = vmatpush.msra.mxu2 %v580_v1  ;;  %v596_v3 = vld [vmem:[%s2775_s1 + $0xf8] sm:$0xff]  ;;  %v595_v5 = vld [vmem:[%s2775_s1 + $0xf0] sm:$0xff]  ;;  %v578_v6 = vld [vmem:[%s2775_s1 + $0x68] sm:$0xff] }
  0x15   : > { %555 = vperm.xlu0 %2052, %v547_v0   ;;  %1995 = vmatpush.msra.mxu3 %v596_v3  ;;  %v594_v7 = vld [vmem:[%s2775_s1 + $0xe8] sm:$0xff]  ;;  %v577_v8 = vld [vmem:[%s2775_s1 + $0x60] sm:$0xff]  ;;  %v576_v10 = vld [vmem:[%s2775_s1 + $0x58] sm:$0xff]  ;;  %v549_v36 = vand.u32 127, %v548_v35 }
  0x16   : > { %1980 = vmatpush.msra.mxu2 %v579_v4  ;;  %597 = vmatpush.msra.mxu0 %v580_v1  ;;  %v593_v9 = vld [vmem:[%s2775_s1 + $0xe0] sm:$0xff]  ;;  %v592_v12 = vld [vmem:[%s2775_s1 + $0xd8] sm:$0xff]  ;;  %v575_v13 = vld [vmem:[%s2775_s1 + $0x50] sm:$0xff] }
  0x17   : > { %1996 = vmatpush.msra.mxu3 %v595_v5  ;;  %620 = vmatpush.msra.mxu1 %v596_v3  ;;  %v546_v11 = vld [vmem:[%s2774_s0] sm:$0xff]  ;;  %v591_v14 = vld [vmem:[%s2775_s1 + $0xd0] sm:$0xff]  ;;  %v574_v15 = vld [vmem:[%s2775_s1 + $0x48] sm:$0xff]  ;;  %v550_v37 = vadd.s32 128, %v549_v36 }
  0x18   : > { %1981 = vmatpush.msra.mxu2 %v578_v6  ;;  %598 = vmatpush.msra.mxu0 %v579_v4  ;;  %v590_v16 = vld [vmem:[%s2775_s1 + $0xc8] sm:$0xff]  ;;  %v573_v17 = vld [vmem:[%s2775_s1 + $0x40] sm:$0xff]  ;;  %v572_v19 = vld [vmem:[%s2775_s1 + $0x38] sm:$0xff] }
  0x19   : > { %1997 = vmatpush.msra.mxu3 %v594_v7  ;;  %621 = vmatpush.msra.mxu1 %v595_v5  ;;  %v589_v18 = vld [vmem:[%s2775_s1 + $0xc0] sm:$0xff]  ;;  %v588_v20 = vld [vmem:[%s2775_s1 + $0xb8] sm:$0xff]  ;;  %v571_v21 = vld [vmem:[%s2775_s1 + $0x30] sm:$0xff] }
  0x1a   : > { %1982 = vmatpush.msra.mxu2 %v577_v8  ;;  %599 = vmatpush.msra.mxu0 %v578_v6  ;;  %v587_v22 = vld [vmem:[%s2775_s1 + $0xb0] sm:$0xff]  ;;  %v570_v23 = vld [vmem:[%s2775_s1 + $0x28] sm:$0xff]  ;;  %v569_v25 = vld [vmem:[%s2775_s1 + $0x20] sm:$0xff] }
  0x1b   : > { %1998 = vmatpush.msra.mxu3 %v593_v9  ;;  %622 = vmatpush.msra.mxu1 %v594_v7  ;;  %v586_v24 = vld [vmem:[%s2775_s1 + $0xa8] sm:$0xff]  ;;  %v585_v26 = vld [vmem:[%s2775_s1 + $0xa0] sm:$0xff]  ;;  %v568_v27 = vld [vmem:[%s2775_s1 + $0x18] sm:$0xff] }
  0x1c   : > { %1983 = vmatpush.msra.mxu2 %v576_v10  ;;  %600 = vmatpush.msra.mxu0 %v577_v8  ;;  %v584_v28 = vld [vmem:[%s2775_s1 + $0x98] sm:$0xff]  ;;  %v567_v29 = vld [vmem:[%s2775_s1 + $0x10] sm:$0xff]  ;;  %v566_v31 = vld [vmem:[%s2775_s1 + $0x8] sm:$0xff] }
  0x1d   : > { %552 = vperm.xlu0 %2052, %v546_v11   ;;  %1999 = vmatpush.msra.mxu3 %v592_v12  ;;  %v583_v30 = vld [vmem:[%s2775_s1 + $0x90] sm:$0xff]  ;;  %v582_v32 = vld [vmem:[%s2775_s1 + $0x88] sm:$0xff]  ;;  %v565_v33 = vld [vmem:[%s2775_s1] sm:$0xff] }
  0x1e   : > { %1984 = vmatpush.msra.mxu2 %v575_v13  ;;  %623 = vmatpush.msra.mxu1 %v593_v9  ;;  %v581_v34 = vld [vmem:[%s2775_s1 + $0x80] sm:$0xff] }
  0x1f   : > { %2000 = vmatpush.msra.mxu3 %v591_v14  ;;  %601 = vmatpush.msra.mxu0 %v576_v10 }
  0x20   : > { %1985 = vmatpush.msra.mxu2 %v574_v15  ;;  %624 = vmatpush.msra.mxu1 %v592_v12 }
  0x21   : > { %2001 = vmatpush.msra.mxu3 %v590_v16  ;;  %602 = vmatpush.msra.mxu0 %v575_v13 }
  0x22   : > { %1986 = vmatpush.msra.mxu2 %v573_v17  ;;  %625 = vmatpush.msra.mxu1 %v591_v14 }
  0x23   : > { %2002 = vmatpush.msra.mxu3 %v589_v18  ;;  %603 = vmatpush.msra.mxu0 %v574_v15 }
  0x24   : > { %1987 = vmatpush.msra.mxu2 %v572_v19  ;;  %626 = vmatpush.msra.mxu1 %v590_v16 }
  0x25   : > { %2003 = vmatpush.msra.mxu3 %v588_v20  ;;  %604 = vmatpush.msra.mxu0 %v573_v17 }
  0x26   : > { %1988 = vmatpush.msra.mxu2 %v571_v21  ;;  %627 = vmatpush.msra.mxu1 %v589_v18 }
  0x27   : > { %2004 = vmatpush.msra.mxu3 %v587_v22  ;;  %605 = vmatpush.msra.mxu0 %v572_v19 }
  0x28   : > { %1989 = vmatpush.msra.mxu2 %v570_v23  ;;  %628 = vmatpush.msra.mxu1 %v588_v20 }
  0x29   : > { %2005 = vmatpush.msra.mxu3 %v586_v24  ;;  %606 = vmatpush.msra.mxu0 %v571_v21 }
  0x2a   : > { %1990 = vmatpush.msra.mxu2 %v569_v25  ;;  %629 = vmatpush.msra.mxu1 %v587_v22 }
  0x2b   : > { %2006 = vmatpush.msra.mxu3 %v585_v26  ;;  %607 = vmatpush.msra.mxu0 %v570_v23 }
  0x2c   : > { %1991 = vmatpush.msra.mxu2 %v568_v27  ;;  %630 = vmatpush.msra.mxu1 %v586_v24 }
  0x2d   : > { %2007 = vmatpush.msra.mxu3 %v584_v28  ;;  %608 = vmatpush.msra.mxu0 %v569_v25 }
  0x2e   : > { %1992 = vmatpush.msra.mxu2 %v567_v29  ;;  %631 = vmatpush.msra.mxu1 %v585_v26 }
  0x2f   : > { %2008 = vmatpush.msra.mxu3 %v583_v30  ;;  %609 = vmatpush.msra.mxu0 %v568_v27 }
  0x30   : > { %1993 = vmatpush.msra.mxu2 %v566_v31  ;;  %632 = vmatpush.msra.mxu1 %v584_v28 }
  0x31   : > { %2009 = vmatpush.msra.mxu3 %v582_v32  ;;  %610 = vmatpush.msra.mxu0 %v567_v29 }
  0x32   : > { %633 = vmatpush.msra.mxu1 %v583_v30  ;;  %1994 = vmatpush.msra.mxu2 %v565_v33 }
  0x33   : > { %611 = vmatpush.msra.mxu0 %v566_v31  ;;  %2010 = vmatpush.msra.mxu3 %v581_v34 }
  0x34   : > { %634 = vmatpush.msra.mxu1 %v582_v32 }
  0x35   : > { %612 = vmatpush.msra.mxu0 %v565_v33 }
  0x36   : > { %635 = vmatpush.msra.mxu1 %v581_v34 }
  0x87   : > { %v556_v38 = vpop.permute.xlu0 %555 }
  0x88   : > { %vm559_vm0 = vcmp.eq.s32.totalorder %v549_v36, %v556_v38  ;;  %vm560_vm1 = vcmp.eq.s32.totalorder %v550_v37, %v556_v38 }
  0x89   : > { %1917 = vmatmul.msk.f32.vlgmr.msra.gmra.mxu2 %vm559_vm0, %v2164_v39  ;;  %1919 = vmatmul.msk.f32.vlgmr.msra.gmra.mxu3 %vm560_vm1, %v2164_v39 }
  0x8f   : > { %v553_v40 = vpop.permute.xlu0 %552 }
  0x90   : > { %vm557_vm2 = vcmp.eq.s32.totalorder %v549_v36, %v553_v40  ;;  %vm558_vm3 = vcmp.eq.s32.totalorder %v550_v37, %v553_v40 }
  0x91   : > { %1916 = vmatmul.msk.f32.vlgmr.msra.gmra.mxu0 %vm557_vm2, %v2164_v39  ;;  %1918 = vmatmul.msk.f32.vlgmr.msra.gmra.mxu1 %vm558_vm3, %v2164_v39 }
 0x10c   : > { %v617_v41 = vpop.f32.mrf.mxu2  ;;  %v640_v42 = vpop.f32.mrf.mxu3 }
 0x10d   : > { %v641_v43 = vadd.f32 %v640_v42, %v617_v41 }
 0x10e   : > { %v614_v44 = vpop.f32.mrf.mxu0  ;;  %v637_v45 = vpop.f32.mrf.mxu1 }
 0x10f   : > { %645 = vst.msk [vmem:[#allocation2 + $0x8] sm:$0xff] %vm643_vm4, %v641_v43  ;;  %v638_v46 = vadd.f32 %v637_v45, %v614_v44 }
 0x111   : > { %644 = vst.msk [vmem:[#allocation2] sm:$0xff] %vm643_vm4, %v638_v46 }
 0x112 PF: > { %vm673_vm5 = vcmask 523264   ;;  %v725_v53 = vld [vmem:[%s2276_s26 + $0x70] sm:$0xff]  ;;  %v726_v54 = vld [vmem:[%s2276_s26 + $0x78] sm:$0xff]  ;;  %v723_v55 = vld [vmem:[%s2276_s26 + $0x60] sm:$0xff]  ;;  %s2792_s17 = scalar_lea.vmem %s2776_s2, %s2261_s15  ;;  %vm873_vm12 = vcmask 130048   ;;  %s2167_s19 = smov 16  }
 0x113   : > { %741 = vmatpush.msra.mxu0 %v725_v53  ;;  %764 = vmatpush.msra.mxu1 %v726_v54  ;;  %v724_v56 = vld [vmem:[%s2276_s26 + $0x68] sm:$0xff]  ;;  %v721_v57 = vld [vmem:[%s2276_s26 + $0x50] sm:$0xff]  ;;  %v722_v58 = vld [vmem:[%s2276_s26 + $0x58] sm:$0xff]  ;;  %s2168_s24 = smov 96   ;;  %s2169_s25 = smov 80  }
 0x114   : > { %v719_v59 = vld [vmem:[%s2276_s26 + $0x40] sm:$0xff]  ;;  %v720_v60 = vld [vmem:[%s2276_s26 + $0x48] sm:$0xff]  ;;  %v717_v61 = vld [vmem:[%s2276_s26 + $0x30] sm:$0xff]  ;;  %s2170_s27 = smov 112   ;;  %s2171_s23 = smov 32  }
 0x115   : > { %742 = vmatpush.msra.mxu0 %v723_v55  ;;  %765 = vmatpush.msra.mxu1 %v724_v56  ;;  %v718_v62 = vld [vmem:[%s2276_s26 + $0x38] sm:$0xff]  ;;  %v715_v63 = vld [vmem:[%s2276_s26 + $0x20] sm:$0xff]  ;;  %v716_v0 = vld [vmem:[%s2276_s26 + $0x28] sm:$0xff]  ;;  %p1966_p5 = scmp.ne.s32.totalorder %s2255_s30, 1 }
 0x116   : > { %v2400_v49 = vld [vmem:[#allocation2 + $0x8] sm:$0xff]  ;;  %v713_v1 = vld [vmem:[%s2276_s26 + $0x10] sm:$0xff]  ;;  %v714_v2 = vld [vmem:[%s2276_s26 + $0x18] sm:$0xff] }
 0x117   : > { %v672_v51 = vmul.f32 %v2400_v49, %v2400_v49  ;;  %743 = vmatpush.msra.mxu0 %v721_v57  ;;  %766 = vmatpush.msra.mxu1 %v722_v58  ;;  %v711_v3 = vld [vmem:[%s2276_s26] sm:$0xff]  ;;  %v712_v4 = vld [vmem:[%s2276_s26 + $0x8] sm:$0xff]  ;;  %v659_v10 = vld [vmem:[%s2784_s10 + $0x38] sm:$0xff]  ;;  %s2165_s26 = smov 64  }
 0x118   : > { %v2396_v47 = vld [vmem:[#allocation2] sm:$0xff]  ;;  %v2430_v9 = vld [vmem:[%s2782_s8 + $0x8] sm:$0xff]  ;;  %v658_v11 = vld [vmem:[%s2784_s10 + $0x30] sm:$0xff]  ;;  %795 = vmatpush.msra.mxu3 %v659_v10 }
 0x119   : > { %v671_v48 = vmul.f32 %v2396_v47, %v2396_v47  ;;  %v677_v52 = vsel %vm673_vm5, %v672_v51, 0.0  ;;  %744 = vmatpush.msra.mxu0 %v719_v59  ;;  %767 = vmatpush.msra.mxu1 %v720_v60  ;;  %v2425_v8 = vld [vmem:[%s2782_s8] sm:$0xff]  ;;  %v657_v12 = vld [vmem:[%s2784_s10 + $0x28] sm:$0xff]  ;;  %v655_v16 = vld [vmem:[%s2784_s10 + $0x18] sm:$0xff] }
 0x11a   : > { %818 = vrot.lane.b32.xlu2 %v2430_v9, %s2165_s26  ;;  %796 = vmatpush.msra.mxu3 %v658_v11  ;;  %v656_v14 = vld [vmem:[%s2784_s10 + $0x20] sm:$0xff]  ;;  %v654_v20 = vld [vmem:[%s2784_s10 + $0x10] sm:$0xff]  ;;  %v653_v22 = vld [vmem:[%s2784_s10 + $0x8] sm:$0xff] }
 0x11b   : > { %v674_v50 = vsel %vm673_vm5, %v671_v48, 0.0  ;;  %745 = vmatpush.msra.mxu0 %v717_v61  ;;  %768 = vmatpush.msra.mxu1 %v718_v62  ;;  %v2068_v28 = vld [vmem:[%s2792_s17] ss:$0 sm:$0xff]  ;;  %v651_v56 = vld [vmem:[%s2783_s9 + $0x8] sm:$0xff]  ;;  %s2166_s17 = smov 48  }
 0x11c   : > { %675 = vadd.xlane.f32.xlu0 %v674_v50  ;;  %797 = vmatpush.msra.mxu3 %v657_v12  ;;  %v652_v39 = vld [vmem:[%s2784_s10] sm:$0xff] }
 0x11d   : > { %746 = vmatpush.msra.mxu0 %v715_v63  ;;  %769 = vmatpush.msra.mxu1 %v716_v0  ;;  %v650_v46 = vld [vmem:[%s2783_s9] sm:$0xff] }
 0x11e   : > { %798 = vmatpush.msra.mxu3 %v656_v14 }
 0x11f   : > { %747 = vmatpush.msra.mxu0 %v713_v1  ;;  %770 = vmatpush.msra.mxu1 %v714_v2 }
 0x120   : > { %799 = vmatpush.msra.mxu3 %v655_v16 }
 0x121   : > { %748 = vmatpush.msra.mxu0 %v711_v3  ;;  %771 = vmatpush.msra.mxu1 %v712_v4 }
 0x122   : > { %800 = vmatpush.msra.mxu3 %v654_v20 }
 0x124   : > { %678 = vadd.xlane.f32.xlu0 %v677_v52  ;;  %801 = vmatpush.msra.mxu3 %v653_v22 }
 0x126   : > { %802 = vmatpush.msra.mxu3 %v652_v39 }
 0x128   : > { %840 = vmatpush.msrb.mxu3 %v659_v10  ;;  %v2505_v10 = vld [vmem:[%s2785_s11] sm:$0xff] }
 0x12a   : > { %841 = vmatpush.msrb.mxu3 %v658_v11 }
 0x12c   : > { %842 = vmatpush.msrb.mxu3 %v657_v12 }
 0x12e   : > { %843 = vmatpush.msrb.mxu3 %v656_v14 }
 0x130   : > { %844 = vmatpush.msrb.mxu3 %v655_v16 }
 0x132   : > { %845 = vmatpush.msrb.mxu3 %v654_v20 }
 0x134   : > { %846 = vmatpush.msrb.mxu3 %v653_v22 }
 0x136   : > { %847 = vmatpush.msrb.mxu3 %v652_v39 }
 0x138   : > { %816 = vrot.lane.b32.xlu0 %v2425_v8, %s2165_s26 }
 0x174   : > { %v819_v59 = vpop.permute.xlu2 %818 }
 0x18f   : > { %v676_v5 = vpop.xlane.xlu0 %675 }
 0x190   : > { %v680_v6 = vmul.f32 0.015625, %v676_v5 }
 0x192   : > { %v682_v7 = vadd.f32 1e-06, %v680_v6 }
 0x194   : > { %2070 = vrsqrt.f32 %v682_v7  ;;  %vm690_vm7 = vweird.f32 %v682_v7 }
 0x197   : > { %v679_v13 = vpop.xlane.xlu0 %678 }
 0x198   : > { %v681_v15 = vmul.f32 0.015625, %v679_v13 }
 0x19a   : > { %v2071_v17 = vpop.eup %2070  ;;  %v683_v18 = vadd.f32 1e-06, %v681_v15 }
 0x19b   : > { %v685_v19 = vmul.f32 %v2071_v17, %v682_v7  ;;  %vm691_vm6 = vweird.f32 %v2071_v17 }
 0x19c   : > { %2072 = vrsqrt.f32 %v683_v18  ;;  %vm692_vm8 = vmor %vm690_vm7, %vm691_vm6  ;;  %vm700_vm9 = vweird.f32 %v683_v18 }
 0x19d   : > { %v686_v21 = vmul.f32 %v2071_v17, %v685_v19 }
 0x19f   : > { %v687_v23 = vmul.f32 0.5, %v686_v21 }
 0x1a1   : > { %v688_v24 = vsub.f32 1.5, %v687_v23 }
 0x1a2   : > { %v2073_v25 = vpop.eup %2072 }
 0x1a3   : > { %v689_v26 = vmul.f32 %v2071_v17, %v688_v24  ;;  %v695_v27 = vmul.f32 %v2073_v25, %v683_v18  ;;  %vm701_vm10 = vweird.f32 %v2073_v25 }
 0x1a4   : > { %vm702_vm11 = vmor %vm700_vm9, %vm701_vm10 }
 0x1a5   : > { %v696_v29 = vmul.f32 %v2073_v25, %v695_v27  ;;  %v693_v30 = vsel %vm692_vm8, %v2071_v17, %v689_v26 }
 0x1a6   : > { %v704_v31 = vmul.f32 %v693_v30, %v2396_v47 }
 0x1a7   : > { %v697_v32 = vmul.f32 0.5, %v696_v29  ;;  %v662_v29 = vld [vmem:[%s2281_s29] sm:$0xff] }
 0x1a8   : > { %v709_v33 = vmul.f32 %v2068_v28, %v704_v31 }
 0x1a9   : > { %v698_v34 = vsub.f32 1.5, %v697_v32 }
 0x1aa   : > { %1920 = vmatmul.msk.f32.vlgmr.msra.gmra.mxu0 %vm673_vm5, %v709_v33  ;;  %1922 = vmatmul.msk.f32.vlgmr.msra.gmra.mxu1 %vm673_vm5, %v709_v33  ;;  %v817_v63 = vpop.permute.xlu0 %816 }
 0x1ab   : > { %v699_v35 = vmul.f32 %v2073_v25, %v698_v34 }
 0x1ad   : > { %v703_v36 = vsel %vm702_vm11, %v2073_v25, %v699_v35 }
 0x1ae   : > { %v705_v37 = vmul.f32 %v703_v36, %v2400_v49 }
 0x1b0   : > { %v710_v38 = vmul.f32 %v2068_v28, %v705_v37  ;;  %v663_v28 = vld [vmem:[%s2281_s29 + $0x8] sm:$0xff] }
 0x1b2   : > { %1921 = vmatmul.msk.f32.gmra.mxu0 %vm673_vm5, %v710_v38  ;;  %1923 = vmatmul.msk.f32.gmra.mxu1 %vm673_vm5, %v710_v38 }
 0x227   : > { %v750_v40 = vpop.f32.mrf.mxu0  ;;  %v2471_v41 = vpop.f32.mrf.mxu1 }
 0x228   : > { %824 = vrot.lane.b32.xlu1 %v750_v40, %s2165_s26  ;;  %1924 = vmatmul.msk.f32.vlgmr.msra.gmra.mxu3 %vm673_vm5, %v750_v40  ;;  %v779_v50 = vmul.f32 %v750_v40, %v2425_v8  ;;  %v822_v0 = vmul.f32 %v817_v63, %v750_v40 }
 0x22f   : > { %v753_v42 = vpop.f32.mrf.mxu0  ;;  %v2475_v43 = vpop.f32.mrf.mxu1 }
 0x230   : > { %979 = vmatpush.msrb.mxu1 %v2475_v43  ;;  %826 = vrot.lane.b32.xlu1 %v753_v42, %s2165_s26  ;;  %v823_v60 = vmul.f32 %v819_v59, %v753_v42  ;;  %v780_v6 = vmul.f32 %v753_v42, %v2430_v9  ;;  %v2512_v9 = vld [vmem:[%s2785_s11 + $0x8] sm:$0xff] }
 0x231   : > { %1925 = vmatmul.msk.f32.gmra.mxu3 %vm673_vm5, %v753_v42 }
 0x232   : > { %980 = vmatpush.msrb.mxu1 %v2471_v41 }
 0x234   : > { %1165 = vmatpush.msra.mxu1 %v663_v28 }
 0x236   : > { %1166 = vmatpush.msra.mxu1 %v662_v29 }
 0x29a   : > { %v825_v44 = vpop.permute.xlu1 %824 }
 0x29b   : > { %1926 = vmatmul.msk.f32.vlgmr.msrb.gmra.mxu3 %vm673_vm5, %v825_v44 }
 0x2a2   : > { %v827_v45 = vpop.permute.xlu1 %826 }
 0x2a3   : > { %1927 = vmatmul.msk.f32.gmra.mxu3 %vm673_vm5, %v827_v45 }
 0x2ab   : > { %v804_v48 = vpop.f32.mrf.mxu3 }
 0x2ac   : > { %v810_v51 = vmul.f32 %v804_v48, %v650_v46 }
 0x2ae   : > { %v2487_v52 = vadd.f32 %v810_v51, %v779_v50 }
 0x2b4   : > { %v807_v53 = vpop.f32.mrf.mxu3 }
 0x2b5   : > { %v811_v5 = vmul.f32 %v807_v53, %v651_v56 }
 0x2b7   : > { %v813_v7 = vadd.f32 %v811_v5, %v780_v6 }
 0x31e   : > { %v849_v54 = vpop.f32.mrf.mxu3 }
 0x31f   : > { %v855_v55 = vmul.f32 %v849_v54, %v650_v46 }
 0x321   : > { %859 = vrot.lane.b32.xlu1 %v855_v55, %s2165_s26 }
 0x326   : > { %v852_v57 = vpop.f32.mrf.mxu3 }
 0x327   : > { %v856_v58 = vmul.f32 %v852_v57, %v651_v56 }
 0x329   : > { %861 = vrot.lane.b32.xlu2 %v856_v58, %s2165_s26 }
 0x383   : > { %v862_v61 = vpop.permute.xlu2 %861 }
 0x384   : > { %v866_v62 = vadd.f32 %v862_v61, %v823_v60 }
 0x386   : > { %871 = vrot.lane.b32.xlu2 %v866_v62, %s2165_s26 }
 0x393   : > { %v860_v1 = vpop.permute.xlu1 %859 }
 0x394   : > { %v865_v2 = vadd.f32 %v860_v1, %v822_v0 }
 0x396   : > { %869 = vrot.lane.b32.xlu1 %v865_v2, %s2165_s26 }
 0x3e0   : > { %v872_v3 = vpop.permute.xlu2 %871 }
 0x3e1   : > { %1928 = vmatpush.xpose.msk.msrb.mxu0 %vm873_vm12, %v872_v3 }
 0x408   : > { %v870_v4 = vpop.permute.xlu1 %869 }
 0x409   : > { %1929 = vmatpush.xpose.msk.msrb.mxu0 %vm873_vm12, %v870_v4 }
 0x40c   : > { %1930 = vmatmul.msk.f32.vlgmr.msrb.gmra.mxu0 %vm873_vm12, %v2487_v52 }
 0x414   : > { %1931 = vmatmul.msk.f32.gmra.mxu0 %vm873_vm12, %v813_v7 }
 0x489   : > { %v901_v8 = vpop.f32.mrf.mxu0 }
 0x48a   : > { %v907_v11 = vmul.f32 0.25, %v901_v8 }
 0x48c   : > { %v909_v12 = vadd.f32 %v907_v11, %v2505_v10 }
 0x48e   : > { %v911_v13 = vsel %vm873_vm12, %v909_v12, -inf }
 0x48f   : > { %912 = vmax.xlane.f32.xlu2 %v911_v13 }
 0x491   : > { %v904_v14 = vpop.f32.mrf.mxu0 }
 0x492   : > { %v908_v15 = vmul.f32 0.25, %v904_v14 }
 0x494   : > { %v910_v16 = vadd.f32 %v908_v15, %v2512_v9 }
 0x496   : > { %v914_v17 = vsel %vm873_vm12, %v910_v16, -inf }
 0x497   : > { %915 = vmax.xlane.f32.xlu1 %v914_v17 }
 0x4b0   : > { %992 = vrot.lane.b32.xlu1 %v865_v2, %s2166_s17 }
 0x4b8   : > { %1337 = vrot.lane.b32.xlu1 %v866_v62, %s2167_s19 }
 0x4c0   : > { %1174 = vrot.lane.b32.xlu1 %v2487_v52, %s2168_s24 }
 0x4c8   : > { %1333 = vrot.lane.b32.xlu1 %v813_v7, %s2169_s25 }
 0x502   : > { %v913_v18 = vpop.xlane.xlu2 %912 }
 0x503   : > { %v917_v19 = vsub.f32 %v909_v12, %v913_v18 }
 0x505   : > { %v919_v20 = vmul.f32 1.442695, %v917_v19 }
 0x507   : > { %2074 = vpow2.f32 %v919_v20 }
 0x50a   : > { %v916_v21 = vpop.xlane.xlu1 %915 }
 0x50b   : > { %v918_v22 = vsub.f32 %v910_v16, %v916_v21 }
 0x50d   : > { %v2075_v23 = vpop.eup %2074  ;;  %v921_v24 = vmul.f32 1.442695, %v918_v22 }
 0x50e   : > { %v923_v25 = vsel %vm873_vm12, %v2075_v23, 0.0 }
 0x50f   : > { %2076 = vpow2.f32 %v921_v24  ;;  %924 = vadd.xlane.f32.xlu0 %v923_v25 }
 0x515   : > { %v2077_v26 = vpop.eup %2076 }
 0x516   : > { %v926_v27 = vsel %vm873_vm12, %v2077_v26, 0.0 }
 0x517   : > { %927 = vadd.xlane.f32.xlu2 %v926_v27 }
 0x522   : > { %v993_v34 = vpop.permute.xlu1 %992 }
 0x523   : > { %988 = vrot.lane.b32.xlu0 %v2487_v52, %s2170_s27 }
 0x52a   : > { %v1338_v54 = vpop.permute.xlu1 %1337 }
 0x52b   : > { %1180 = vrot.lane.b32.xlu0 %v866_v62, %s2171_s23 }
 0x52f   : > { %994 = vrot.lane.b32.xlu2 %v866_v62, %s2166_s17 }
 0x533   : > { %1335 = vrot.lane.b32.xlu0 %v865_v2, %s2167_s19 }
 0x537   : > { %990 = vrot.lane.b32.xlu2 %v813_v7, %s2170_s27 }
 0x53b   : > { %1176 = vrot.lane.b32.xlu0 %v813_v7, %s2168_s24 }
 0x53f   : > { %1178 = vrot.lane.b32.xlu2 %v865_v2, %s2171_s23  ;;  %v1175_v2 = vpop.permute.xlu1 %1174 }
 0x547   : > { %1331 = vrot.lane.b32.xlu2 %v2487_v52, %s2169_s25  ;;  %v1334_v17 = vpop.permute.xlu1 %1333 }
 0x582   : > { %v925_v30 = vpop.xlane.xlu0 %924 }
 0x583   : > { %2078 = vrcp.f32 %v925_v30  ;;  %v940_v36 = vand.u32 2147483648, %v925_v30  ;;  %v938_v38 = vand.u32 2147483647, %v925_v30  ;;  %vm934_vm14 = vweird.f32 %v925_v30 }
 0x585   : > { %v941_v42 = vor.u32 1.1754944e-38, %v940_v36  ;;  %vm939_vm0 = vcmp.eq.f32.partialorder %v938_v38, 8.507059e+37 }
 0x589   : > { %v2079_v31 = vpop.eup %2078 }
 0x58a   : > { %v930_v32 = vmul.f32 %v2079_v31, %v925_v30  ;;  %v928_v33 = vpop.xlane.xlu2 %927  ;;  %vm935_vm13 = vweird.f32 %v2079_v31 }
 0x58b   : > { %2080 = vrcp.f32 %v928_v33  ;;  %vm936_vm15 = vmor %vm934_vm14, %vm935_vm13  ;;  %v955_v52 = vand.u32 2147483648, %v928_v33  ;;  %v953_v56 = vand.u32 2147483647, %v928_v33  ;;  %vm949_vm2 = vweird.f32 %v928_v33 }
 0x58c   : > { %v931_v35 = vsub.f32 1.0, %v930_v32 }
 0x58d   : > { %v956_v58 = vor.u32 1.1754944e-38, %v955_v52  ;;  %vm954_vm4 = vcmp.eq.f32.partialorder %v953_v56, 8.507059e+37 }
 0x58e   : > { %v932_v37 = vmul.f32 %v2079_v31, %v931_v35 }
 0x590   : > { %v933_v39 = vadd.f32 %v2079_v31, %v932_v37 }
 0x591   : > { %v2081_v40 = vpop.eup %2080 }
 0x592   : > { %v945_v44 = vmul.f32 %v2081_v40, %v928_v33  ;;  %v995_v45 = vpop.permute.xlu2 %994  ;;  %v937_v46 = vsel %vm936_vm15, %v2079_v31, %v933_v39  ;;  %vm950_vm1 = vweird.f32 %v2081_v40 }
 0x593   : > { %1934 = vmatpush.xpose.msk.msra.mxu2 %vm873_vm12, %v995_v45  ;;  %v942_v48 = vsel %vm939_vm0, %v941_v42, %v937_v46  ;;  %vm951_vm3 = vmor %vm949_vm2, %vm950_vm1 }
 0x594   : > { %v946_v50 = vsub.f32 1.0, %v945_v44  ;;  %v943_v51 = vmul.f32 %v2075_v23, %v942_v48 }
 0x595   : > { %v989_v53 = vpop.permute.xlu0 %988 }
 0x596   : > { %v947_v55 = vmul.f32 %v2081_v40, %v946_v50  ;;  %1932 = vmatmul.msk.f32.vlgmr.msrb.gmra.mxu1 %vm873_vm12, %v943_v51 }
 0x597   : > { %1952 = vmatpush.xpose.msk.msrb.mxu1 %vm873_vm12, %v1338_v54  ;;  %1935 = vmatpush.xpose.msk.msra.mxu2 %vm873_vm12, %v993_v34 }
 0x598   : > { %v948_v57 = vadd.f32 %v2081_v40, %v947_v55 }
 0x59a   : > { %v991_v59 = vpop.permute.xlu2 %990  ;;  %1936 = vmatmul.msk.f32.vlgmr.msra.gmra.mxu2 %vm873_vm12, %v989_v53  ;;  %v952_v60 = vsel %vm951_vm3, %v2081_v40, %v948_v57 }
 0x59b   : > { %v957_v61 = vsel %vm954_vm4, %v956_v58, %v952_v60 }
 0x59c   : > { %v958_v62 = vmul.f32 %v2077_v26, %v957_v61 }
 0x59d   : > { %v1181_v63 = vpop.permute.xlu0 %1180 }
 0x59e   : > { %1933 = vmatmul.msk.f32.gmra.mxu1 %vm873_vm12, %v958_v62  ;;  %1944 = vmatpush.xpose.msk.msrb.mxu2 %vm873_vm12, %v1181_v63 }
 0x5a2   : > { %v1179_v0 = vpop.permute.xlu2 %1178  ;;  %1937 = vmatmul.msk.f32.gmra.mxu2 %vm873_vm12, %v991_v59 }
 0x5a3   : > { %1945 = vmatpush.xpose.msk.msrb.mxu2 %vm873_vm12, %v1179_v0 }
 0x5a5   : > { %v1336_v1 = vpop.permute.xlu0 %1335 }
 0x5a6   : > { %1953 = vmatpush.xpose.msk.msrb.mxu1 %vm873_vm12, %v1336_v1 }
 0x5aa   : > { %1946 = vmatmul.msk.f32.vlgmr.msrb.gmra.mxu2 %vm873_vm12, %v1175_v2  ;;  %v1332_v12 = vpop.permute.xlu2 %1331 }
 0x5ad   : > { %v1177_v3 = vpop.permute.xlu0 %1176 }
 0x5b2   : > { %1947 = vmatmul.msk.f32.gmra.mxu2 %vm873_vm12, %v1177_v3 }
 0x613   : > { %v982_v4 = vpop.f32.mrf.mxu1 }
 0x614   : > { %1942 = vmatmul.msk.f32.vlgmr.msra.gmra.mxu1 %vm873_vm12, %v982_v4 }
 0x61b   : > { %v985_v5 = vpop.f32.mrf.mxu1 }
 0x61c   : > { %1943 = vmatmul.msk.f32.gmra.mxu1 %vm873_vm12, %v985_v5 }
 0x61d   : > { %v1021_v6 = vpop.f32.mrf.mxu2 }
 0x61e   : > { %v1027_v7 = vmul.f32 0.25, %v1021_v6 }
 0x620   : > { %v1029_v8 = vadd.f32 %v1027_v7, %v2505_v10 }
 0x622   : > { %v1031_v11 = vsel %vm873_vm12, %v1029_v8, -inf }
 0x623   : > { %1032 = vmax.xlane.f32.xlu2 %v1031_v11 }
 0x624   : > { %1954 = vmatmul.msk.f32.vlgmr.msrb.gmra.mxu1 %vm873_vm12, %v1332_v12 }
 0x625   : > { %v1024_v13 = vpop.f32.mrf.mxu2 }
 0x626   : > { %v1028_v14 = vmul.f32 0.25, %v1024_v13 }
 0x628   : > { %v1030_v15 = vadd.f32 %v1028_v14, %v2512_v9 }
 0x62a   : > { %v1034_v16 = vsel %vm873_vm12, %v1030_v15, -inf }
 0x62b   : > { %1035 = vmax.xlane.f32.xlu0 %v1034_v16 }
 0x62c   : > { %1955 = vmatmul.msk.f32.gmra.mxu1 %vm873_vm12, %v1334_v17 }
 0x62d   : > { %v1207_v18 = vpop.f32.mrf.mxu2 }
 0x62e   : > { %v1213_v19 = vmul.f32 0.25, %v1207_v18 }
 0x630   : > { %v1215_v20 = vadd.f32 %v1213_v19, %v2505_v10 }
 0x632   : > { %v1217_v21 = vsel %vm873_vm12, %v1215_v20, -inf }
 0x633   : > { %1218 = vmax.xlane.f32.xlu2 %v1217_v21 }
 0x635   : > { %v1210_v32 = vpop.f32.mrf.mxu2 }
 0x636   : > { %v1214_v35 = vmul.f32 0.25, %v1210_v32 }
 0x638   : > { %v1216_v45 = vadd.f32 %v1214_v35, %v2512_v9 }
 0x63a   : > { %v1220_v48 = vsel %vm873_vm12, %v1216_v45, -inf }
 0x691   : > { %v2553_v22 = vpop.f32.mrf.mxu1 }
 0x696   : > { %v1033_v23 = vpop.xlane.xlu2 %1032 }
 0x697   : > { %v1037_v24 = vsub.f32 %v1029_v8, %v1033_v23 }
 0x699   : > { %v1039_v25 = vmul.f32 1.442695, %v1037_v24  ;;  %v2555_v26 = vpop.f32.mrf.mxu1 }
 0x69b   : > { %2082 = vpow2.f32 %v1039_v25 }
 0x69e   : > { %v1036_v29 = vpop.xlane.xlu0 %1035 }
 0x69f   : > { %v1038_v34 = vsub.f32 %v1030_v15, %v1036_v29 }
 0x6a1   : > { %v2557_v27 = vpop.eup %2082  ;;  %v1364_v28 = vpop.f32.mrf.mxu1  ;;  %v1041_v39 = vmul.f32 1.442695, %v1038_v34 }
 0x6a2   : > { %v1370_v30 = vmul.f32 0.25, %v1364_v28  ;;  %v1043_v31 = vsel %vm873_vm12, %v2557_v27, 0.0 }
 0x6a3   : > { %1044 = vadd.xlane.f32.xlu2 %v1043_v31 }
 0x6a4   : > { %v1372_v33 = vadd.f32 %v1370_v30, %v2505_v10 }
 0x6a6   : > { %v1219_v36 = vpop.xlane.xlu2 %1218  ;;  %v1374_v37 = vsel %vm873_vm12, %v1372_v33, -inf }
 0x6a7   : > { %v1223_v38 = vsub.f32 %v1215_v20, %v1219_v36  ;;  %1375 = vmax.xlane.f32.xlu1 %v1374_v37 }
 0x6a9   : > { %v1225_v40 = vmul.f32 1.442695, %v1223_v38  ;;  %v1367_v42 = vpop.f32.mrf.mxu1 }
 0x6aa   : > { %v1371_v44 = vmul.f32 0.25, %v1367_v42 }
 0x6ab   : > { %2084 = vpow2.f32 %v1225_v40 }
 0x6ac   : > { %v1373_v46 = vadd.f32 %v1371_v44, %v2512_v9  ;;  %2086 = vpow2.f32 %v1041_v39  ;;  %v2577_v9 = vpack.i.bf16 %v2471_v41, %v2475_v43  ;;  %v665_v39 = vld [vmem:[%s2281_s29 + $0x18] sm:$0xff] }
 0x6ad   : > { %1136 = vmatpush.msra.mxu0 %v665_v39 }
 0x6ae   : > { %v1377_v10 = vsel %vm873_vm12, %v1373_v46, -inf }
 0x6af   : > { %1221 = vmax.xlane.f32.xlu1 %v1220_v48  ;;  %1378 = vmax.xlane.f32.xlu0 %v1377_v10  ;;  %v664_v10 = vld [vmem:[%s2281_s29 + $0x10] sm:$0xff] }
 0x6b0   : > { %1137 = vmatpush.msra.mxu0 %v664_v10 }
 0x6b1   : > { %v2567_v50 = vpop.eup %2084 }
 0x6b2   : > { %v1229_v51 = vsel %vm873_vm12, %v2567_v50, 0.0  ;;  %v2571_v52 = vpop.eup %2086 }
 0x6b3   : > { %1230 = vadd.xlane.f32.xlu2 %v1229_v51  ;;  %v1046_v53 = vsel %vm873_vm12, %v2571_v52, 0.0 }
 0x6b7   : > { %1047 = vadd.xlane.f32.xlu0 %v1046_v53 }
 0x6cb   : > { %2054 = vrot.lane.b32.xlu0 %v2577_v9, %s2170_s27 }
 0x716   : > { %v1045_v57 = vpop.xlane.xlu2 %1044 }
 0x717   : > { %v1060_v15 = vand.u32 2147483648, %v1045_v57  ;;  %vm1054_vm7 = vweird.f32 %v1045_v57  ;;  %v1058_v16 = vand.u32 2147483647, %v1045_v57 }
 0x719   : > { %v1061_v19 = vor.u32 1.1754944e-38, %v1060_v15  ;;  %vm1059_vm9 = vcmp.eq.f32.partialorder %v1058_v16, 8.507059e+37 }
 0x71a   : > { %v1376_v54 = vpop.xlane.xlu1 %1375 }
 0x71b   : > { %v1380_v55 = vsub.f32 %v1372_v33, %v1376_v54 }
 0x71d   : > { %v1382_v56 = vmul.f32 1.442695, %v1380_v55 }
 0x71f   : > { %2088 = vpow2.f32 %v1382_v56 }
 0x720   : > { %2090 = vrcp.f32 %v1045_v57 }
 0x722   : > { %v1379_v58 = vpop.xlane.xlu0 %1378  ;;  %v1222_v59 = vpop.xlane.xlu1 %1221 }
 0x723   : > { %v1381_v60 = vsub.f32 %v1373_v46, %v1379_v58  ;;  %v1224_v61 = vsub.f32 %v1216_v45, %v1222_v59 }
 0x725   : > { %v2581_v62 = vpop.eup %2088  ;;  %v1384_v63 = vmul.f32 1.442695, %v1381_v60  ;;  %v1227_v0 = vmul.f32 1.442695, %v1224_v61 }
 0x726   : > { %v1386_v41 = vsel %vm873_vm12, %v2581_v62, 0.0  ;;  %v2091_v43 = vpop.eup %2090 }
 0x727   : > { %2092 = vpow2.f32 %v1384_v63  ;;  %1387 = vadd.xlane.f32.xlu1 %v1386_v41  ;;  %v1050_v2 = vmul.f32 %v2091_v43, %v1045_v57  ;;  %vm1055_vm6 = vweird.f32 %v2091_v43 }
 0x728   : > { %2094 = vpow2.f32 %v1227_v0  ;;  %vm1056_vm8 = vmor %vm1054_vm7, %vm1055_vm6 }
 0x729   : > { %v1051_v6 = vsub.f32 1.0, %v1050_v2  ;;  %v667_v2 = vld [vmem:[%s2281_s29 + $0x28] sm:$0xff] }
 0x72a   : > { %v1048_v1 = vpop.xlane.xlu0 %1047  ;;  %1320 = vmatpush.msrb.mxu0 %v667_v2  ;;  %v1534_v2 = vld [vmem:[%s2286_s18 + $0x20] sm:$0xff] }
 0x72b   : > { %2096 = vrcp.f32 %v1048_v1  ;;  %v1052_v11 = vmul.f32 %v2091_v43, %v1051_v6  ;;  %v1075_v25 = vand.u32 2147483648, %v1048_v1  ;;  %vm1069_vm11 = vweird.f32 %v1048_v1 }
 0x72c   : > { %v1073_v30 = vand.u32 2147483647, %v1048_v1 }
 0x72d   : > { %v2585_v3 = vpop.eup %2092  ;;  %v1053_v13 = vadd.f32 %v2091_v43, %v1052_v11  ;;  %v1076_v32 = vor.u32 1.1754944e-38, %v1075_v25 }
 0x72e   : > { %v2587_v4 = vpop.eup %2094  ;;  %v1389_v5 = vsel %vm873_vm12, %v2585_v3, 0.0  ;;  %vm1074_vm14 = vcmp.eq.f32.partialorder %v1073_v30, 8.507059e+37 }
 0x72f   : > { %1390 = vadd.xlane.f32.xlu1 %v1389_v5  ;;  %v1232_v7 = vsel %vm873_vm12, %v2587_v4, 0.0  ;;  %v1057_v17 = vsel %vm1056_vm8, %v2091_v43, %v1053_v13 }
 0x730   : > { %1233 = vadd.xlane.f32.xlu2 %v1232_v7  ;;  %v1062_v21 = vsel %vm1059_vm9, %v1061_v19, %v1057_v17 }
 0x731   : > { %v2097_v8 = vpop.eup %2096  ;;  %v1063_v29 = vmul.f32 %v2557_v27, %v1062_v21  ;;  %v1231_v27 = vpop.xlane.xlu2 %1230 }
 0x732   : > { %v1065_v12 = vmul.f32 %v2097_v8, %v1048_v1  ;;  %vm1070_vm10 = vweird.f32 %v2097_v8  ;;  %2098 = vrcp.f32 %v1231_v27  ;;  %v1246_v48 = vand.u32 2147483648, %v1231_v27 }
 0x733   : > { %vm1071_vm13 = vmor %vm1069_vm11, %vm1070_vm10  ;;  %vm1240_vm0 = vweird.f32 %v1231_v27  ;;  %v1244_v51 = vand.u32 2147483647, %v1231_v27 }
 0x734   : > { %v1066_v14 = vsub.f32 1.0, %v1065_v12  ;;  %v1247_v54 = vor.u32 1.1754944e-38, %v1246_v48 }
 0x735   : > { %vm1245_vm2 = vcmp.eq.f32.partialorder %v1244_v51, 8.507059e+37 }
 0x736   : > { %v1067_v18 = vmul.f32 %v2097_v8, %v1066_v14 }
 0x738   : > { %v1068_v24 = vadd.f32 %v2097_v8, %v1067_v18  ;;  %v2099_v35 = vpop.eup %2098 }
 0x739   : > { %v1236_v36 = vmul.f32 %v2099_v35, %v1231_v27  ;;  %vm1241_vm15 = vweird.f32 %v2099_v35  ;;  %v666_v27 = vld [vmem:[%s2281_s29 + $0x20] sm:$0xff] }
 0x73a   : > { %v1072_v31 = vsel %vm1071_vm13, %v2097_v8, %v1068_v24  ;;  %vm1242_vm1 = vmor %vm1240_vm0, %vm1241_vm15  ;;  %1321 = vmatpush.msrb.mxu0 %v666_v27 }
 0x73b   : > { %v1077_v33 = vsel %vm1074_vm14, %v1076_v32, %v1072_v31  ;;  %v1237_v38 = vsub.f32 1.0, %v1236_v36  ;;  %v668_v36 = vld [vmem:[%s2281_s29 + $0x30] sm:$0xff] }
 0x73c   : > { %v1078_v34 = vmul.f32 %v2571_v52, %v1077_v33 }
 0x73d   : > { %v2055_v20 = vpop.permute.xlu0 %2054  ;;  %v1238_v40 = vmul.f32 %v2099_v35, %v1237_v38 }
 0x73e   : > { %v2056_v23 = vunpack.i.l.bf16 %v2055_v20  ;;  %v2057_v28 = vunpack.i.h.bf16 %v2055_v20 }
 0x73f   : > { %v1239_v46 = vadd.f32 %v2099_v35, %v1238_v40 }
 0x740   : > { %1107 = vmatpush.msra.mxu3 %v2056_v23 }
 0x741   : > { %v1243_v53 = vsel %vm1242_vm1, %v2099_v35, %v1239_v46  ;;  %v669_v35 = vld [vmem:[%s2281_s29 + $0x38] sm:$0xff] }
 0x742   : > { %1108 = vmatpush.msra.mxu3 %v2057_v28  ;;  %v1248_v57 = vsel %vm1245_vm2, %v1247_v54, %v1243_v53 }
 0x743   : > { %1938 = vmatmul.msk.f32.vlgmr.msra.gmra.mxu3 %vm873_vm12, %v1063_v29  ;;  %v1249_v43 = vmul.f32 %v2567_v50, %v1248_v57 }
 0x748   : > { %2064 = vrot.lane.b32.xlu2 %v2577_v9, %s2168_s24  ;;  %2059 = vrot.lane.b32.xlu1 %v2577_v9, %s2169_s25 }
 0x74b   : > { %1939 = vmatmul.msk.f32.gmra.mxu3 %vm873_vm12, %v1078_v34 }
 0x79a   : > { %v2601_v37 = vpop.xlane.xlu1 %1387 }
 0x79b   : > { %2100 = vrcp.f32 %v2601_v37  ;;  %v1403_v14 = vand.u32 2147483648, %v2601_v37  ;;  %vm1397_vm9 = vweird.f32 %v2601_v37  ;;  %v1401_v15 = vand.u32 2147483647, %v2601_v37 }
 0x79d   : > { %v1404_v19 = vor.u32 1.1754944e-38, %v1403_v14  ;;  %vm1402_vm11 = vcmp.eq.f32.partialorder %v1401_v15, 8.507059e+37 }
 0x7a1   : > { %v2101_v45 = vpop.eup %2100 }
 0x7a2   : > { %v2605_v44 = vpop.xlane.xlu1 %1390  ;;  %v1393_v52 = vmul.f32 %v2101_v45, %v2601_v37  ;;  %vm1398_vm8 = vweird.f32 %v2101_v45 }
 0x7a3   : > { %v1234_v42 = vpop.xlane.xlu2 %1233  ;;  %vm1399_vm10 = vmor %vm1397_vm9, %vm1398_vm8  ;;  %v1418_v25 = vand.u32 2147483648, %v2605_v44  ;;  %vm1412_vm14 = vweird.f32 %v2605_v44  ;;  %v1416_v29 = vand.u32 2147483647, %v2605_v44 }
 0x7a4   : > { %2102 = vrcp.f32 %v1234_v42  ;;  %v1394_v58 = vsub.f32 1.0, %v1393_v52  ;;  %v1261_v63 = vand.u32 2147483648, %v1234_v42  ;;  %v1259_v1 = vand.u32 2147483647, %v1234_v42 }
 0x7a5   : > { %2104 = vrcp.f32 %v2605_v44  ;;  %vm1255_vm4 = vweird.f32 %v1234_v42  ;;  %v1419_v31 = vor.u32 1.1754944e-38, %v1418_v25  ;;  %vm1417_vm0 = vcmp.eq.f32.partialorder %v1416_v29, 8.507059e+37 }
 0x7a6   : > { %v1395_v5 = vmul.f32 %v2101_v45, %v1394_v58  ;;  %v1262_v8 = vor.u32 1.1754944e-38, %v1261_v63  ;;  %vm1260_vm7 = vcmp.eq.f32.partialorder %v1259_v1, 8.507059e+37  ;;  %v1544_v58 = vld [vmem:[%s2286_s18 + $0x70] sm:$0xff]  ;;  %v1541_v63 = vld [vmem:[%s2286_s18 + $0x58] sm:$0xff] }
 0x7a7   : > { %v1537_v1 = vld [vmem:[%s2286_s18 + $0x38] sm:$0xff] }
 0x7a8   : > { %v1396_v12 = vadd.f32 %v2101_v45, %v1395_v5  ;;  %v1535_v5 = vld [vmem:[%s2286_s18 + $0x28] sm:$0xff] }
 0x7aa   : > { %v2103_v9 = vpop.eup %2102  ;;  %v1400_v17 = vsel %vm1399_vm10, %v2101_v45, %v1396_v12 }
 0x7ab   : > { %v1251_v55 = vmul.f32 %v2103_v9, %v1234_v42  ;;  %v2065_v56 = vpop.permute.xlu2 %2064  ;;  %v2105_v60 = vpop.eup %2104  ;;  %vm1256_vm3 = vweird.f32 %v2103_v9  ;;  %v1405_v21 = vsel %vm1402_vm11, %v1404_v19, %v1400_v17 }
 0x7ac   : > { %v2066_v59 = vunpack.i.l.bf16 %v2065_v56  ;;  %v2067_v0 = vunpack.i.h.bf16 %v2065_v56  ;;  %v1408_v6 = vmul.f32 %v2105_v60, %v2605_v44  ;;  %vm1257_vm6 = vmor %vm1255_vm4, %vm1256_vm3  ;;  %vm1413_vm13 = vweird.f32 %v2105_v60 }
 0x7ad   : > { %v1252_v61 = vsub.f32 1.0, %v1251_v55  ;;  %vm1414_vm15 = vmor %vm1412_vm14, %vm1413_vm13 }
 0x7ae   : > { %1291 = vmatpush.msrb.mxu3 %v2066_v59  ;;  %v1409_v13 = vsub.f32 1.0, %v1408_v6  ;;  %v1545_v59 = vld [vmem:[%s2286_s18 + $0x78] sm:$0xff]  ;;  %v1532_v6 = vld [vmem:[%s2286_s18 + $0x10] sm:$0xff] }
 0x7af   : > { %v1253_v41 = vmul.f32 %v2103_v9, %v1252_v61  ;;  %1583 = vmatpush.msra.mxu1 %v1545_v59  ;;  %v1543_v61 = vld [vmem:[%s2286_s18 + $0x68] sm:$0xff] }
 0x7b0   : > { %1292 = vmatpush.msrb.mxu3 %v2067_v0  ;;  %v1410_v18 = vmul.f32 %v2105_v60, %v1409_v13  ;;  %v1538_v0 = vld [vmem:[%s2286_s18 + $0x40] sm:$0xff] }
 0x7b1   : > { %1948 = vmatmul.msk.f32.vlgmr.msrb.gmra.mxu3 %vm873_vm12, %v1249_v43  ;;  %v1254_v7 = vadd.f32 %v2103_v9, %v1253_v41  ;;  %1584 = vmatpush.msra.mxu1 %v1543_v61  ;;  %v1539_v41 = vld [vmem:[%s2286_s18 + $0x48] sm:$0xff]  ;;  %v1536_v43 = vld [vmem:[%s2286_s18 + $0x30] sm:$0xff] }
 0x7b2   : > { %v1411_v24 = vadd.f32 %v2105_v60, %v1410_v18  ;;  %1477 = vmatpush.msra.mxu3 %v669_v35 }
 0x7b3   : > { %v1258_v11 = vsel %vm1257_vm6, %v2103_v9, %v1254_v7  ;;  %1585 = vmatpush.msra.mxu1 %v1541_v63  ;;  %v1533_v7 = vld [vmem:[%s2286_s18 + $0x18] sm:$0xff] }
 0x7b4   : > { %v1263_v50 = vsel %vm1260_vm7, %v1262_v8, %v1258_v11  ;;  %v1415_v30 = vsel %vm1414_vm15, %v2105_v60, %v1411_v24  ;;  %1478 = vmatpush.msra.mxu3 %v668_v36  ;;  %v1542_v60 = vld [vmem:[%s2286_s18 + $0x60] sm:$0xff]  ;;  %v1531_v11 = vld [vmem:[%s2286_s18 + $0x8] sm:$0xff]  ;;  %v1655_v36 = vld [vmem:[%s2291_s20 + $0x78] sm:$0xff] }
 0x7b5   : > { %v1264_v16 = vmul.f32 %v2587_v4, %v1263_v50  ;;  %v1406_v4 = vmul.f32 %v2581_v62, %v1405_v21  ;;  %v1420_v32 = vsel %vm1417_vm0, %v1419_v31, %v1415_v30  ;;  %1586 = vmatpush.msra.mxu1 %v1539_v41  ;;  %v1530_v8 = vld [vmem:[%s2286_s18] sm:$0xff] }
 0x7b6   : > { %v1421_v34 = vmul.f32 %v2585_v3, %v1420_v32 }
 0x7b7   : > { %1587 = vmatpush.msra.mxu1 %v1537_v1 }
 0x7b9   : > { %1949 = vmatmul.msk.f32.gmra.mxu3 %vm873_vm12, %v1264_v16  ;;  %1588 = vmatpush.msra.mxu1 %v1535_v5 }
 0x7ba   : > { %v2060_v20 = vpop.permute.xlu1 %2059 }
 0x7bb   : > { %v2061_v23 = vunpack.i.l.bf16 %v2060_v20  ;;  %v2062_v28 = vunpack.i.h.bf16 %v2060_v20  ;;  %1589 = vmatpush.msra.mxu1 %v1533_v7 }
 0x7bd   : > { %1448 = vmatpush.msra.mxu2 %v2061_v23  ;;  %1590 = vmatpush.msra.mxu1 %v1531_v11 }
 0x7bf   : > { %1449 = vmatpush.msra.mxu2 %v2062_v28  ;;  %v2069_v28 = vld [vmem:[%s521_s21] ss:$0 sm:$0xff] }
 0x7c0   : > { %1956 = vmatmul.msk.f32.vlgmr.msra.gmra.mxu2 %vm873_vm12, %v1406_v4 }
 0x7c1   : > { %1656 = vmatpush.msrb.mxu2 %v1655_v36 }
 0x7c6   : > { %v1110_v33 = vpop.f32.mrf.mxu3 }
 0x7c7   : > { %1940 = vmatmul.msk.f32.vlgmr.msra.gmra.mxu0 %vm873_vm12, %v1110_v33 }
 0x7c8   : > { %1957 = vmatmul.msk.f32.gmra.mxu2 %vm873_vm12, %v1421_v34  ;;  %1560 = vmatpush.msra.mxu0 %v1544_v58 }
 0x7ca   : > { %1561 = vmatpush.msra.mxu0 %v1542_v60 }
 0x7ce   : > { %v1113_v62 = vpop.f32.mrf.mxu3 }
 0x7cf   : > { %1941 = vmatmul.msk.f32.gmra.mxu0 %vm873_vm12, %v1113_v62 }
 0x834   : > { %v1294_v37 = vpop.f32.mrf.mxu3 }
 0x835   : > { %1950 = vmatmul.msk.f32.vlgmr.msrb.gmra.mxu0 %vm873_vm12, %v1294_v37  ;;  %v1654_v37 = vld [vmem:[%s2291_s20 + $0x70] sm:$0xff] }
 0x836   : > { %1657 = vmatpush.msrb.mxu2 %v1654_v37 }
 0x83c   : > { %v1297_v38 = vpop.f32.mrf.mxu3 }
 0x83d   : > { %1951 = vmatmul.msk.f32.gmra.mxu0 %vm873_vm12, %v1297_v38  ;;  %v1653_v38 = vld [vmem:[%s2291_s20 + $0x68] sm:$0xff] }
 0x83e   : > { %1658 = vmatpush.msrb.mxu2 %v1653_v38 }
 0x843   : > { %v1451_v3 = vpop.f32.mrf.mxu2 }
 0x844   : > { %1958 = vmatmul.msk.f32.vlgmr.msra.gmra.mxu3 %vm873_vm12, %v1451_v3  ;;  %v1139_v40 = vpop.f32.mrf.mxu0  ;;  %v1652_v3 = vld [vmem:[%s2291_s20 + $0x60] sm:$0xff] }
 0x845   : > { %v1169_v45 = vadd.f32 %v2553_v22, %v1139_v40  ;;  %1659 = vmatpush.msrb.mxu2 %v1652_v3  ;;  %v1650_v40 = vld [vmem:[%s2291_s20 + $0x50] sm:$0xff] }
 0x84b   : > { %v1454_v39 = vpop.f32.mrf.mxu2 }
 0x84c   : > { %1959 = vmatmul.msk.f32.gmra.mxu3 %vm873_vm12, %v1454_v39  ;;  %v1142_v42 = vpop.f32.mrf.mxu0  ;;  %v1651_v39 = vld [vmem:[%s2291_s20 + $0x58] sm:$0xff] }
 0x84d   : > { %v1172_v53 = vadd.f32 %v2555_v26, %v1142_v42  ;;  %1660 = vmatpush.msrb.mxu2 %v1651_v39  ;;  %v1649_v42 = vld [vmem:[%s2291_s20 + $0x48] sm:$0xff] }
 0x84f   : > { %1661 = vmatpush.msrb.mxu2 %v1650_v40 }
 0x851   : > { %1662 = vmatpush.msrb.mxu2 %v1649_v42 }
 0x8b2   : > { %v1323_v44 = vpop.f32.mrf.mxu0 }
 0x8b3   : > { %v1329_v46 = vadd.f32 %v1323_v44, %v1169_v45  ;;  %v1648_v44 = vld [vmem:[%s2291_s20 + $0x40] sm:$0xff]  ;;  %v1647_v45 = vld [vmem:[%s2291_s20 + $0x38] sm:$0xff] }
 0x8b4   : > { %1663 = vmatpush.msrb.mxu2 %v1648_v44 }
 0x8b6   : > { %1664 = vmatpush.msrb.mxu2 %v1647_v45 }
 0x8ba   : > { %v1326_v52 = vpop.f32.mrf.mxu0 }
 0x8bb   : > { %v1330_v54 = vadd.f32 %v1326_v52, %v1172_v53  ;;  %v1643_v52 = vld [vmem:[%s2291_s20 + $0x18] sm:$0xff]  ;;  %v1642_v53 = vld [vmem:[%s2291_s20 + $0x10] sm:$0xff] }
 0x8c7   : > { %v1480_v48 = vpop.f32.mrf.mxu3 }
 0x8c8   : > { %v1486_v10 = vadd.f32 %v1480_v48, %v1329_v46  ;;  %v1646_v46 = vld [vmem:[%s2291_s20 + $0x30] sm:$0xff]  ;;  %v1645_v48 = vld [vmem:[%s2291_s20 + $0x28] sm:$0xff] }
 0x8c9   : > { %1665 = vmatpush.msrb.mxu2 %v1646_v46 }
 0x8ca   : > { %v2637_v51 = vadd.f32 %v1486_v10, %v2396_v47  ;;  %v1644_v10 = vld [vmem:[%s2291_s20 + $0x20] sm:$0xff] }
 0x8cb   : > { %1666 = vmatpush.msrb.mxu2 %v1645_v48 }
 0x8cc   : > { %v1491_v9 = vmul.f32 %v2637_v51, %v2637_v51 }
 0x8cd   : > { %1667 = vmatpush.msrb.mxu2 %v1644_v10 }
 0x8ce   : > { %v1493_v55 = vsel %vm673_vm5, %v1491_v9, 0.0  ;;  %v1641_v9 = vld [vmem:[%s2291_s20 + $0x8] sm:$0xff] }
 0x8cf   : > { %1494 = vadd.xlane.f32.xlu0 %v1493_v55  ;;  %v1483_v22 = vpop.f32.mrf.mxu3  ;;  %1668 = vmatpush.msrb.mxu2 %v1643_v52 }
 0x8d0   : > { %v1487_v56 = vadd.f32 %v1483_v22, %v1330_v54  ;;  %v1640_v22 = vld [vmem:[%s2291_s20] sm:$0xff] }
 0x8d1   : > { %1669 = vmatpush.msrb.mxu2 %v1642_v53 }
 0x8d2   : > { %v2644_v57 = vadd.f32 %v1487_v56, %v2400_v49  ;;  %v1540_v49 = vld [vmem:[%s2286_s18 + $0x50] sm:$0xff] }
 0x8d3   : > { %1562 = vmatpush.msra.mxu0 %v1540_v49  ;;  %1670 = vmatpush.msrb.mxu2 %v1641_v9 }
 0x8d4   : > { %v1492_v47 = vmul.f32 %v2644_v57, %v2644_v57 }
 0x8d5   : > { %1563 = vmatpush.msra.mxu0 %v1538_v0  ;;  %1671 = vmatpush.msrb.mxu2 %v1640_v22 }
 0x8d6   : > { %v1496_v26 = vsel %vm673_vm5, %v1492_v47, 0.0 }
 0x8d7   : > { %1497 = vadd.xlane.f32.xlu1 %v1496_v26  ;;  %1564 = vmatpush.msra.mxu0 %v1536_v43 }
 0x8d9   : > { %1565 = vmatpush.msra.mxu0 %v1534_v2 }
 0x8db   : > { %1566 = vmatpush.msra.mxu0 %v1532_v6 }
 0x8dd   : > { %1567 = vmatpush.msra.mxu0 %v1530_v8 }
 0x942   : > { %v1495_v12 = vpop.xlane.xlu0 %1494 }
 0x943   : > { %v1499_v13 = vmul.f32 0.015625, %v1495_v12 }
 0x945   : > { %v1501_v50 = vadd.f32 1e-06, %v1499_v13 }
 0x947   : > { %2106 = vrsqrt.f32 %v1501_v50  ;;  %vm1509_vm1 = vweird.f32 %v1501_v50 }
 0x94a   : > { %v1498_v14 = vpop.xlane.xlu1 %1497 }
 0x94b   : > { %v1500_v15 = vmul.f32 0.015625, %v1498_v14 }
 0x94d   : > { %v2107_v16 = vpop.eup %2106  ;;  %v1502_v17 = vadd.f32 1e-06, %v1500_v15 }
 0x94e   : > { %v1504_v18 = vmul.f32 %v2107_v16, %v1501_v50  ;;  %vm1510_vm12 = vweird.f32 %v2107_v16 }
 0x94f   : > { %2108 = vrsqrt.f32 %v1502_v17  ;;  %vm1511_vm2 = vmor %vm1509_vm1, %vm1510_vm12  ;;  %vm1519_vm4 = vweird.f32 %v1502_v17 }
 0x950   : > { %v1505_v19 = vmul.f32 %v2107_v16, %v1504_v18 }
 0x952   : > { %v1506_v20 = vmul.f32 0.5, %v1505_v19 }
 0x954   : > { %v1507_v21 = vsub.f32 1.5, %v1506_v20 }
 0x955   : > { %v2109_v23 = vpop.eup %2108 }
 0x956   : > { %v1508_v24 = vmul.f32 %v2107_v16, %v1507_v21  ;;  %v1514_v25 = vmul.f32 %v2109_v23, %v1502_v17  ;;  %vm1520_vm3 = vweird.f32 %v2109_v23 }
 0x957   : > { %vm1521_vm6 = vmor %vm1519_vm4, %vm1520_vm3 }
 0x958   : > { %v1512_v4 = vsel %vm1511_vm2, %v2107_v16, %v1508_v24  ;;  %v1515_v29 = vmul.f32 %v2109_v23, %v1514_v25 }
 0x959   : > { %v1523_v30 = vmul.f32 %v1512_v4, %v2637_v51 }
 0x95a   : > { %v1516_v31 = vmul.f32 0.5, %v1515_v29 }
 0x95b   : > { %v1528_v32 = vmul.f32 %v2069_v28, %v1523_v30 }
 0x95c   : > { %v1517_v33 = vsub.f32 1.5, %v1516_v31 }
 0x95d   : > { %1960 = vmatmul.msk.f32.vlgmr.msra.gmra.mxu0 %vm673_vm5, %v1528_v32  ;;  %1962 = vmatmul.msk.f32.vlgmr.msra.gmra.mxu1 %vm673_vm5, %v1528_v32 }
 0x95e   : > { %v1518_v34 = vmul.f32 %v2109_v23, %v1517_v33 }
 0x960   : > { %v1522_v62 = vsel %vm1521_vm6, %v2109_v23, %v1518_v34 }
 0x961   : > { %v1524_v27 = vmul.f32 %v1522_v62, %v2644_v57 }
 0x963   : > { %v1529_v35 = vmul.f32 %v2069_v28, %v1524_v27 }
 0x965   : > { %1961 = vmatmul.msk.f32.gmra.mxu0 %vm673_vm5, %v1529_v35  ;;  %1963 = vmatmul.msk.f32.gmra.mxu1 %vm673_vm5, %v1529_v35 }
 0x9da   : > { %v1569_v54 = vpop.f32.mrf.mxu0  ;;  %v1592_v11 = vpop.f32.mrf.mxu1 }
 0x9db   : > { %v1964_v55 = vmul.f32 -1.442695, %v1569_v54 }
 0x9dd   : > { %2110 = vpow2.f32 %v1964_v55 }
 0x9e2   : > { %v1572_v56 = vpop.f32.mrf.mxu0  ;;  %v1595_v23 = vpop.f32.mrf.mxu1 }
 0x9e3   : > { %v2111_v47 = vpop.eup %2110  ;;  %v1965_v26 = vmul.f32 -1.442695, %v1572_v56 }
 0x9e4   : > { %v1604_v58 = vadd.f32 1.0, %v2111_v47 }
 0x9e5   : > { %2112 = vpow2.f32 %v1965_v26 }
 0x9e6   : > { %2114 = vrcp.f32 %v1604_v58  ;;  %v1617_v0 = vand.u32 2147483648, %v1604_v58  ;;  %v1615_v43 = vand.u32 2147483647, %v1604_v58  ;;  %vm1611_vm8 = vweird.f32 %v1604_v58 }
 0x9e8   : > { %v1618_v5 = vor.u32 1.1754944e-38, %v1617_v0  ;;  %vm1616_vm10 = vcmp.eq.f32.partialorder %v1615_v43, 8.507059e+37 }
 0x9eb   : > { %v2113_v59 = vpop.eup %2112 }
 0x9ec   : > { %v2115_v60 = vpop.eup %2114  ;;  %v1605_v61 = vadd.f32 1.0, %v2113_v59 }
 0x9ed   : > { %v1607_v49 = vmul.f32 %v2115_v60, %v1604_v58  ;;  %vm1612_vm7 = vweird.f32 %v2115_v60 }
 0x9ee   : > { %2116 = vrcp.f32 %v1605_v61  ;;  %vm1613_vm9 = vmor %vm1611_vm8, %vm1612_vm7  ;;  %v1632_v50 = vand.u32 2147483648, %v1605_v61  ;;  %v1630_v16 = vand.u32 2147483647, %v1605_v61  ;;  %vm1626_vm13 = vweird.f32 %v1605_v61 }
 0x9ef   : > { %v1608_v63 = vsub.f32 1.0, %v1607_v49 }
 0x9f0   : > { %v1633_v18 = vor.u32 1.1754944e-38, %v1632_v50  ;;  %vm1631_vm15 = vcmp.eq.f32.partialorder %v1630_v16, 8.507059e+37 }
 0x9f1   : > { %v1609_v41 = vmul.f32 %v2115_v60, %v1608_v63 }
 0x9f3   : > { %v1610_v1 = vadd.f32 %v2115_v60, %v1609_v41 }
 0x9f4   : > { %v2117_v2 = vpop.eup %2116 }
 0x9f5   : > { %v1614_v6 = vsel %vm1613_vm9, %v2115_v60, %v1610_v1  ;;  %v1622_v7 = vmul.f32 %v2117_v2, %v1605_v61  ;;  %vm1627_vm11 = vweird.f32 %v2117_v2 }
 0x9f6   : > { %v1619_v8 = vsel %vm1616_vm10, %v1618_v5, %v1614_v6  ;;  %vm1628_vm14 = vmor %vm1626_vm13, %vm1627_vm11 }
 0x9f7   : > { %v1636_v12 = vmul.f32 %v1619_v8, %v1569_v54  ;;  %v1623_v13 = vsub.f32 1.0, %v1622_v7 }
 0x9f9   : > { %v1638_v14 = vmul.f32 %v1636_v12, %v1592_v11  ;;  %v1624_v15 = vmul.f32 %v2117_v2, %v1623_v13 }
 0x9fb   : > { %v1625_v17 = vadd.f32 %v2117_v2, %v1624_v15  ;;  %1672 = vmatmul.f32.vlgmr.msrb.gmra.mxu2 %v1638_v14 }
 0x9fd   : > { %v1629_v19 = vsel %vm1628_vm14, %v2117_v2, %v1625_v17 }
 0x9fe   : > { %v1634_v20 = vsel %vm1631_vm15, %v1633_v18, %v1629_v19 }
 0x9ff   : > { %v1637_v21 = vmul.f32 %v1634_v20, %v1572_v56 }
 0xa01   : > { %v1639_v24 = vmul.f32 %v1637_v21, %v1595_v23 }
 0xa03   : > { %1675 = vmatmul.f32.gmra.mxu2 %v1639_v24 }
 0xa7e   : > { %v1673_v25 = vpop.f32.mrf.mxu2 }
 0xa7f   : > { %v2693_v28 = vadd.f32 %v1673_v25, %v2637_v51 }
 0xa81   : > { %1681 = vst.msk [vmem:[#allocation2] sm:$0xff] %vm673_vm5, %v2693_v28 }
 0xa85   : > { %1686 = sbr.rel (%p1966_p5) target bundleno = 2979 (0xba3), region = 84 }
 0xa86   : > { %v1676_v4 = vpop.f32.mrf.mxu2 }
 0xa87   : > { %v2698_v29 = vadd.f32 %v1676_v4, %v2644_v57 }
 0xa89   : > { %1682 = vst.msk [vmem:[#allocation2 + $0x8] sm:$0xff] %vm673_vm5, %v2698_v29 }
 0xa8a   : > { %v1689_v30 = vmul.f32 %v2698_v29, %v2698_v29  ;;  %v1688_v51 = vmul.f32 %v2693_v28, %v2693_v28  ;;  %v1741_v57 = vld [vmem:[%s2787_s13 + $0x70] sm:$0xff]  ;;  %v1742_v33 = vld [vmem:[%s2787_s13 + $0x78] sm:$0xff]  ;;  %v1739_v34 = vld [vmem:[%s2787_s13 + $0x60] sm:$0xff] }
 0xa8b   : > { %2011 = vmatpush.msra.mxu2 %v1741_v57  ;;  %2019 = vmatpush.msra.mxu3 %v1742_v33  ;;  %v1740_v62 = vld [vmem:[%s2787_s13 + $0x68] sm:$0xff]  ;;  %v1737_v27 = vld [vmem:[%s2787_s13 + $0x50] sm:$0xff]  ;;  %v1738_v35 = vld [vmem:[%s2787_s13 + $0x58] sm:$0xff] }
 0xa8c   : > { %v1693_v31 = vsel %vm673_vm5, %v1689_v30, 0.0  ;;  %v1690_v32 = vsel %vm673_vm5, %v1688_v51, 0.0  ;;  %1757 = vmatpush.msra.mxu0 %v1741_v57  ;;  %1780 = vmatpush.msra.mxu1 %v1742_v33  ;;  %v1735_v36 = vld [vmem:[%s2787_s13 + $0x40] sm:$0xff]  ;;  %v1736_v37 = vld [vmem:[%s2787_s13 + $0x48] sm:$0xff]  ;;  %v1733_v38 = vld [vmem:[%s2787_s13 + $0x30] sm:$0xff] }
 0xa8d   : > { %1694 = vadd.xlane.f32.xlu0 %v1693_v31  ;;  %2012 = vmatpush.msra.mxu2 %v1739_v34  ;;  %v1734_v3 = vld [vmem:[%s2787_s13 + $0x38] sm:$0xff]  ;;  %v1731_v39 = vld [vmem:[%s2787_s13 + $0x20] sm:$0xff]  ;;  %v1732_v40 = vld [vmem:[%s2787_s13 + $0x28] sm:$0xff] }
 0xa8e   : > { %2020 = vmatpush.msra.mxu3 %v1740_v62  ;;  %1758 = vmatpush.msra.mxu0 %v1739_v34  ;;  %v1729_v42 = vld [vmem:[%s2787_s13 + $0x10] sm:$0xff]  ;;  %v1730_v44 = vld [vmem:[%s2787_s13 + $0x18] sm:$0xff]  ;;  %v1727_v45 = vld [vmem:[%s2787_s13] sm:$0xff] }
 0xa8f   : > { %1781 = vmatpush.msra.mxu1 %v1740_v62  ;;  %2013 = vmatpush.msra.mxu2 %v1737_v27  ;;  %v1728_v46 = vld [vmem:[%s2787_s13 + $0x8] sm:$0xff]  ;;  %v2118_v61 = vld [vmem:[%s2786_s12] ss:$0 sm:$0xff] }
 0xa90   : > { %2021 = vmatpush.msra.mxu3 %v1738_v35  ;;  %1759 = vmatpush.msra.mxu0 %v1737_v27 }
 0xa91   : > { %1782 = vmatpush.msra.mxu1 %v1738_v35  ;;  %2014 = vmatpush.msra.mxu2 %v1735_v36 }
 0xa92   : > { %2022 = vmatpush.msra.mxu3 %v1736_v37  ;;  %1760 = vmatpush.msra.mxu0 %v1735_v36 }
 0xa93   : > { %1783 = vmatpush.msra.mxu1 %v1736_v37  ;;  %2015 = vmatpush.msra.mxu2 %v1733_v38 }
 0xa94   : > { %2023 = vmatpush.msra.mxu3 %v1734_v3  ;;  %1761 = vmatpush.msra.mxu0 %v1733_v38 }
 0xa95   : > { %1691 = vadd.xlane.f32.xlu0 %v1690_v32  ;;  %1784 = vmatpush.msra.mxu1 %v1734_v3 }
 0xa96   : > { %2016 = vmatpush.msra.mxu2 %v1731_v39  ;;  %2024 = vmatpush.msra.mxu3 %v1732_v40 }
 0xa97   : > { %1762 = vmatpush.msra.mxu0 %v1731_v39  ;;  %1785 = vmatpush.msra.mxu1 %v1732_v40 }
 0xa98   : > { %2017 = vmatpush.msra.mxu2 %v1729_v42  ;;  %2025 = vmatpush.msra.mxu3 %v1730_v44 }
 0xa99   : > { %1763 = vmatpush.msra.mxu0 %v1729_v42  ;;  %1786 = vmatpush.msra.mxu1 %v1730_v44 }
 0xa9a   : > { %2018 = vmatpush.msra.mxu2 %v1727_v45  ;;  %2026 = vmatpush.msra.mxu3 %v1728_v46 }
 0xa9b   : > { %1764 = vmatpush.msra.mxu0 %v1727_v45  ;;  %1787 = vmatpush.msra.mxu1 %v1728_v46 }
 0xb00   : > { %v1695_v48 = vpop.xlane.xlu0 %1694 }
 0xb01   : > { %v1697_v10 = vmul.f32 0.015625, %v1695_v48 }
 0xb03   : > { %v1699_v52 = vadd.f32 1e-06, %v1697_v10 }
 0xb05   : > { %2119 = vrsqrt.f32 %v1699_v52  ;;  %vm1716_vm12 = vweird.f32 %v1699_v52 }
 0xb08   : > { %v1692_v53 = vpop.xlane.xlu0 %1691 }
 0xb09   : > { %v1696_v9 = vmul.f32 0.015625, %v1692_v53 }
 0xb0b   : > { %v2120_v54 = vpop.eup %2119  ;;  %v1698_v55 = vadd.f32 1e-06, %v1696_v9 }
 0xb0c   : > { %v1711_v22 = vmul.f32 %v2120_v54, %v1699_v52  ;;  %vm1717_vm0 = vweird.f32 %v2120_v54 }
 0xb0d   : > { %2121 = vrsqrt.f32 %v1698_v55  ;;  %vm1718_vm1 = vmor %vm1716_vm12, %vm1717_vm0  ;;  %vm1706_vm3 = vweird.f32 %v1698_v55 }
 0xb0e   : > { %v1712_v56 = vmul.f32 %v2120_v54, %v1711_v22 }
 0xb10   : > { %v1713_v47 = vmul.f32 0.5, %v1712_v56 }
 0xb12   : > { %v1714_v26 = vsub.f32 1.5, %v1713_v47 }
 0xb13   : > { %v2122_v58 = vpop.eup %2121 }
 0xb14   : > { %v1701_v59 = vmul.f32 %v2122_v58, %v1698_v55  ;;  %v1715_v60 = vmul.f32 %v2120_v54, %v1714_v26  ;;  %vm1707_vm2 = vweird.f32 %v2122_v58 }
 0xb15   : > { %vm1708_vm4 = vmor %vm1706_vm3, %vm1707_vm2 }
 0xb16   : > { %v1702_v49 = vmul.f32 %v2122_v58, %v1701_v59  ;;  %v1719_v63 = vsel %vm1718_vm1, %v2120_v54, %v1715_v60 }
 0xb17   : > { %v1721_v0 = vmul.f32 %v1719_v63, %v2698_v29 }
 0xb18   : > { %v1703_v41 = vmul.f32 0.5, %v1702_v49 }
 0xb19   : > { %v1726_v43 = vmul.f32 %v2118_v61, %v1721_v0 }
 0xb1a   : > { %v1704_v1 = vsub.f32 1.5, %v1703_v41 }
 0xb1b   : > { %1968 = vmatmul.msk.f32.vlgmr.msra.gmra.mxu2 %vm673_vm5, %v1726_v43  ;;  %1970 = vmatmul.msk.f32.vlgmr.msra.gmra.mxu3 %vm673_vm5, %v1726_v43 }
 0xb1c   : > { %v1705_v2 = vmul.f32 %v2122_v58, %v1704_v1 }
 0xb1e   : > { %v1709_v5 = vsel %vm1708_vm4, %v2122_v58, %v1705_v2 }
 0xb1f   : > { %v1720_v6 = vmul.f32 %v1709_v5, %v2693_v28 }
 0xb21   : > { %v1725_v7 = vmul.f32 %v2118_v61, %v1720_v6 }
 0xb23   : > { %1967 = vmatmul.msk.f32.vlgmr.msra.gmra.mxu0 %vm673_vm5, %v1725_v7  ;;  %1969 = vmatmul.msk.f32.vlgmr.msra.gmra.mxu1 %vm673_vm5, %v1725_v7 }
 0xb9e   : > { %v1769_v8 = vpop.f32.mrf.mxu2  ;;  %v1792_v11 = vpop.f32.mrf.mxu3 }
 0xb9f   : > { %1797 = vst [vmem:[#allocation3 + $0x10] sm:$0xff] %v1769_v8 }
 0xba0   : > { %1798 = vst [vmem:[#allocation3 + $0x18] sm:$0xff] %v1792_v11  ;;  %v1766_v12 = vpop.f32.mrf.mxu0  ;;  %v1789_v13 = vpop.f32.mrf.mxu1 }
 0xba1   : > { %1795 = vst [vmem:[#allocation3] sm:$0xff] %v1766_v12 }
 0xba2   : > { %1796 = vst [vmem:[#allocation3 + $0x8] sm:$0xff] %v1789_v13 }
 0xba3 PF: > { %p2031_p6 = scmp.eq.s32.totalorder %s2255_s30, 1  ;;  %s2172_s16 = smov [#allocation3]  }
 0xba4   : > { %s1804_s14 = sshll.u32 %s2172_s16, 4  ;;  %s2793_s17 = sld [smem:[#allocation7_spill]]  ;;  %s1805_s14 = int_to_ptr.vmem [resolvable:$true] %s1804_s14 }
 0xba5   : > { %s2173_s25 = smov 256  }
 0xbaa   : > { %s1806_s24 = sshll.u32 %s2793_s17, 4  ;;  %s1807_s24 = int_to_ptr.hbm [resolvable:$true] %s1806_s24 }
 0xbab   : > { %2028 = dma.vmem_to_hbm [thread:$0]  (%p2031_p6), %s1805_s14, 512, %s1807_s24, [#allocation4], %s2173_s25, %s2173_s25, %s2167_s19  }
 0xbac   : > { %2156 = dma.done.wait (%p2031_p6), [#allocation4], 512  }
 0xbad   : > { %2158 = vsyncadd (%p2031_p6), [#allocation4], 4294966784 }
 0xbae PF: > { %s2794_s27 = sld [smem:[#allocation6_spill]] }
 0xbb4   : > { %s25_s29 = sadd.s32 1, %s2794_s27  }
 0xbb5   : > { %p22_p7 = scmp.ge.s32.totalorder %s25_s29, 4  }
 0xbb7   :  { %24 = sbr.rel (!%p22_p7) target bundleno = 3 (0x3), region = 126 }
 0xbbc   :  { %1823 = vsyncpa [#allocation4], 1 }
 0xbbd   :  { %1825 = vsyncpa [#allocation4 + $0x1], 1 }

</bundles_post_ra>
